<compile_context>
chip_gen: v7x
topology: tpu7x:2x2x1
jax: 0.10.0
libtpu: 0.0.40
codegen_flags: <defaults>
</compile_context>

<pallas_src>
import jax
import jax.numpy as jnp
from jax.experimental import pallas as pl
from jax.experimental.pallas import tpu as pltpu


# ----------------------------- kernels ------------------------------------ #

def _kernel_with_hidden(x_ref, w_enc_ref, b_enc_ref, w_dec_ref, b_out_ref,
                        out_ref, hid_ref, acc_ref):
    j = pl.program_id(1)

    # Encoder for this hidden tile: ReLU(x @ W_enc[:, j] + b_enc'[j]).
    pre = jnp.dot(x_ref[...], w_enc_ref[...],
                  preferred_element_type=jnp.float32) + b_enc_ref[...]
    hid_ref[...] = jnp.maximum(pre, 0.0).astype(hid_ref.dtype)

    # Decoder partial sum, fed from the just-written (bf16) hid block so the
    # decoder matmul runs at native MXU rates and no extra f32 block is live.
    partial = jnp.dot(hid_ref[...], w_dec_ref[...],
                      preferred_element_type=jnp.float32)

    @pl.when(j == 0)
    def _():
        acc_ref[...] = partial          # init with first partial (no zero-fill)

    @pl.when(j > 0)
    def _():
        acc_ref[...] += partial

    @pl.when(j == pl.num_programs(1) - 1)
    def _():
        out_ref[...] = (acc_ref[...] + b_out_ref[...]).astype(out_ref.dtype)


def _make_kernel_no_hidden(hid_dtype):
    def kernel(x_ref, w_enc_ref, b_enc_ref, w_dec_ref, b_out_ref,
               out_ref, acc_ref):
        j = pl.program_id(1)
        pre = jnp.dot(x_ref[...], w_enc_ref[...],
                      preferred_element_type=jnp.float32) + b_enc_ref[...]
        hid = jnp.maximum(pre, 0.0).astype(hid_dtype)
        partial = jnp.dot(hid, w_dec_ref[...],
                          preferred_element_type=jnp.float32)

        @pl.when(j == 0)
        def _():
            acc_ref[...] = partial

        @pl.when(j > 0)
        def _():
            acc_ref[...] += partial

        @pl.when(j == pl.num_programs(1) - 1)
        def _():
            out_ref[...] = (acc_ref[...] + b_out_ref[...]).astype(out_ref.dtype)
    return kernel


# --------------------------- tile selection -------------------------------- #

def _divisor_tile(total, desired, mult=128):
    """Largest multiple of `mult` <= desired that divides `total`, else full."""
    desired = min(desired, total)
    t = (desired // mult) * mult
    while t >= mult:
        if total % t == 0:
            return t
        t -= mult
    return total


def _vmem_budget_bytes():
    try:
        cap = int(pltpu.get_tpu_info().vmem_capacity_bytes)
    except Exception:
        cap = 64 * 1024 * 1024          # conservative (v7x per-TC VMEM)
    # Leave ~1/8 headroom for Mosaic internal scratch; cap at 112 MiB.
    return min((cap * 7) // 8, 112 * 1024 * 1024)


def _footprint_bytes(tm, th, d_in, d_out, in_bytes, out_bytes, hid_bytes,
                     return_hidden):
    dbl = 2  # BlockSpec double-buffering
    streamed = dbl * (tm * d_in + d_in * th + th * d_out) * in_bytes
    biases = dbl * (th + d_out) * 4
    outs = dbl * tm * d_out * out_bytes
    hid = dbl * tm * th * hid_bytes if return_hidden else 0
    acc = tm * d_out * 4
    return streamed + biases + outs + hid + acc


# ------------------------------ forward ------------------------------------ #

def transcoder_forward(x, w_enc, b_enc, b_dec, w_dec, b_dec_out, *,
                       tm=512, th=512, compute_dtype=jnp.bfloat16,
                       return_hidden=True):
    """x: (N, d_in) -> (output (N, d_out), hidden_acts (N, d_hidden) or None)."""
    N, d_in = x.shape
    d_hidden = w_enc.shape[1]
    d_out = w_dec.shape[1]

    b_enc = jnp.reshape(b_enc, (1, d_hidden))
    b_dec = jnp.reshape(b_dec, (1, d_in))
    b_dec_out = jnp.reshape(b_dec_out, (1, d_out))

    # Fold the pre-encoder bias subtraction into the encoder bias (f32, once):
    #   (x - b_dec) @ W_enc + b_enc == x @ W_enc + (b_enc - b_dec @ W_enc)
    b_enc_eff = (b_enc.astype(jnp.float32)
                 - jnp.dot(b_dec.astype(jnp.float32),
                           w_enc.astype(jnp.float32),
                           preferred_element_type=jnp.float32))
    b_out_f32 = b_dec_out.astype(jnp.float32)

    # bf16 MXU path (f32 accumulation stays inside the kernel).
    x_c = x.astype(compute_dtype)
    w_enc_c = w_enc.astype(compute_dtype)
    w_dec_c = w_dec.astype(compute_dtype)

    out_dtype = x.dtype
    in_bytes = jnp.dtype(compute_dtype).itemsize
    out_bytes = jnp.dtype(out_dtype).itemsize
    hid_bytes = jnp.dtype(compute_dtype).itemsize

    # ---- tile selection ----
    # th: 128-multiple divisor of d_hidden (or full) => no padded hidden cols.
    th = _divisor_tile(d_hidden, th, mult=128)

    # tm: big enough to amortize weight re-streaming, but keep >= 2 row tiles
    # so the "parallel" row axis can shard across v7x's 2 TensorCores.
    tm = min(tm, N)
    if tm >= N and N >= 256:
        tm = -(-N // 2)
    if tm < N:
        tm = max(8, (tm // 8) * 8)

    # Fit the double-buffered working set in the actual VMEM; shrink th first
    # (doesn't change HBM weight traffic), then tm.
    budget = _vmem_budget_bytes()
    while (_footprint_bytes(tm, th, d_in, d_out, in_bytes, out_bytes,
                            hid_bytes, return_hidden) > budget and th > 128):
        new_th = _divisor_tile(d_hidden, max(128, th // 2), mult=128)
        if new_th >= th:
            break
        th = new_th
    while (_footprint_bytes(tm, th, d_in, d_out, in_bytes, out_bytes,
                            hid_bytes, return_hidden) > budget and tm > 8):
        tm = max(8, ((tm // 2) // 8) * 8)

    grid_m = pl.cdiv(N, tm)
    grid_h = pl.cdiv(d_hidden, th)
    grid = (grid_m, grid_h)

    # ---- cost estimate (advisory): weights are re-streamed grid_m times ----
    cost = pl.CostEstimate(
        flops=2 * N * d_hidden * (d_in + d_out),
        transcendentals=0,
        bytes_accessed=int(
            N * d_in * in_bytes
            + grid_m * (d_in * d_hidden + d_hidden * d_out) * in_bytes
            + (d_hidden + d_out) * 4
            + N * d_out * out_bytes
            + (N * d_hidden * hid_bytes if return_hidden else 0)),
    )

    in_specs = [
        pl.BlockSpec((tm, d_in), lambda i, j: (i, 0)),      # x rows (resident over j)
        pl.BlockSpec((d_in, th), lambda i, j: (0, j)),      # W_enc hidden tile
        pl.BlockSpec((1, th), lambda i, j: (0, j)),         # folded encoder bias
        pl.BlockSpec((th, d_out), lambda i, j: (j, 0)),     # W_dec hidden tile
        pl.BlockSpec((1, d_out), lambda i, j: (0, 0)),      # decoder output bias
    ]
    out_spec = pl.BlockSpec((tm, d_out), lambda i, j: (i, 0))   # out (resident over j)

    compiler_params = pltpu.CompilerParams(
        # Rows are independent (shardable across v7x's 2 TCs); the hidden axis
        # carries the decoder accumulation -> "arbitrary".
        dimension_semantics=("parallel", "arbitrary"),
        vmem_limit_bytes=int(budget),
    )

    if return_hidden:
        out, hid = pl.pallas_call(
            _kernel_with_hidden,
            out_shape=(
                jax.ShapeDtypeStruct((N, d_out), out_dtype),
                jax.ShapeDtypeStruct((N, d_hidden), compute_dtype),
            ),
            grid_spec=pltpu.PrefetchScalarGridSpec(
                num_scalar_prefetch=0,
                grid=grid,
                in_specs=in_specs,
                out_specs=[
                    out_spec,
                    pl.BlockSpec((tm, th), lambda i, j: (i, j)),   # hidden_acts
                ],
                scratch_shapes=[pltpu.VMEM((tm, d_out), jnp.float32)],
            ),
            compiler_params=compiler_params,
            cost_estimate=cost,
        )(x_c, w_enc_c, b_enc_eff, w_dec_c, b_out_f32)
        return out, hid

    out = pl.pallas_call(
        _make_kernel_no_hidden(compute_dtype),
        out_shape=jax.ShapeDtypeStruct((N, d_out), out_dtype),
        grid_spec=pltpu.PrefetchScalarGridSpec(
            num_scalar_prefetch=0,
            grid=grid,
            in_specs=in_specs,
            out_specs=out_spec,
            scratch_shapes=[pltpu.VMEM((tm, d_out), jnp.float32)],
        ),
        compiler_params=compiler_params,
        cost_estimate=cost,
    )(x_c, w_enc_c, b_enc_eff, w_dec_c, b_out_f32)
    return out, None


class TranscoderWrapper:
    """Mirrors the PyTorch wrapper: caches hidden_acts / out, returns output."""

    def __init__(self, params, layer=None):
        self.params = params
        self.hidden_acts = None
        self.additional_gradients = None  # TODO(synk): additional_gradients hook is backward-pass plumbing with no Pallas-forward equivalent; forward uses None as in default usage.
        self.out = None

    def __call__(self, x):
        out, hid = transcoder_forward(x, *self.params, return_hidden=True)
        self.hidden_acts = hid   # cached in bf16 (compute dtype)
        self.out = out
        return out


if __name__ == "__main__":
    # Small but tiling-exercising shapes: batch=4, seq=128 -> N=512 rows
    # (2 row tiles -> both v7x TCs busy), d_in=d_out=128, d_hidden=1024
    # (2 hidden tiles of 512).
    batch, seq, d_in, d_hidden, d_out = 4, 128, 128, 1024, 128
    N = batch * seq

    key = jax.random.PRNGKey(0)
    k_x, k_we, k_be, k_bd, k_wd, k_bo = jax.random.split(key, 6)

    x = jax.random.normal(k_x, (N, d_in), dtype=jnp.float32)
    w_enc = jax.random.normal(k_we, (d_in, d_hidden), dtype=jnp.float32) * 0.05
    b_enc = jax.random.normal(k_be, (1, d_hidden), dtype=jnp.float32) * 0.01
    b_dec = jax.random.normal(k_bd, (1, d_in), dtype=jnp.float32) * 0.01
    w_dec = jax.random.normal(k_wd, (d_hidden, d_out), dtype=jnp.float32) * 0.05
    b_dec_out = jax.random.normal(k_bo, (1, d_out), dtype=jnp.float32) * 0.01

    wrapper = TranscoderWrapper((w_enc, b_enc, b_dec, w_dec, b_dec_out))
    out = wrapper(x)
    out = jax.block_until_ready(out)
    hid = jax.block_until_ready(wrapper.hidden_acts)

    # Pure-JAX f32 reference (kernel runs the matmuls in bf16 with f32
    # accumulation, and caches hidden_acts in bf16 -> loose tolerances).
    h_ref = jnp.maximum((x - b_dec) @ w_enc + b_enc, 0.0)
    o_ref = h_ref @ w_dec + b_dec_out
    assert jnp.allclose(hid.astype(jnp.float32), h_ref, atol=5e-2, rtol=5e-2)
    assert jnp.allclose(out, o_ref, atol=5e-2, rtol=5e-2)

    print("KERNEL_OK")
</pallas_src>

<mosaic_0001>
module attributes {stable_mosaic.version = 11 : i64} {
  func.func @_kernel_with_hidden(%arg0: i32, %arg1: i32, %arg2: memref<256x128xbf16, #tpu.memory_space<vmem>>, %arg3: memref<128x512xbf16, #tpu.memory_space<vmem>>, %arg4: memref<1x512xf32, #tpu.memory_space<vmem>>, %arg5: memref<512x128xbf16, #tpu.memory_space<vmem>>, %arg6: memref<1x128xf32, #tpu.memory_space<vmem>>, %arg7: memref<256x128xf32, #tpu.memory_space<vmem>>, %arg8: memref<256x512xbf16, #tpu.memory_space<vmem>>, %arg9: memref<256x128xf32, #tpu.memory_space<vmem>>) attributes {dimension_semantics = [#tpu.dimension_semantics<parallel>, #tpu.dimension_semantics<arbitrary>], iteration_bounds = array<i64: 2, 2>, scalar_prefetch = 0 : i64, scratch_operands = 1 : i64, tpu.core_type = #tpu.core_type<tc>, window_params = [{transform_indices = @transform_0, window_bounds = array<i64: 256, 128>}, {transform_indices = @transform_1, window_bounds = array<i64: 128, 512>}, {transform_indices = @transform_2, window_bounds = array<i64: 1, 512>}, {transform_indices = @transform_3, window_bounds = array<i64: 512, 128>}, {pipeline_mode = #tpu.pipeline_mode<synchronous>, transform_indices = @transform_4, window_bounds = array<i64: 1, 128>}, {transform_indices = @transform_5, window_bounds = array<i64: 256, 128>}, {transform_indices = @transform_6, window_bounds = array<i64: 256, 512>}]} {
    %c0 = arith.constant 0 : index
    %c0_0 = arith.constant 0 : index
    %0 = vector.load %arg2[%c0, %c0_0] : memref<256x128xbf16, #tpu.memory_space<vmem>>, vector<256x128xbf16>
    %c0_1 = arith.constant 0 : index
    %c0_2 = arith.constant 0 : index
    %1 = vector.load %arg3[%c0_1, %c0_2] : memref<128x512xbf16, #tpu.memory_space<vmem>>, vector<128x512xbf16>
    %cst = arith.constant dense<0.000000e+00> : vector<256x512xf32>
    %2 = tpu.matmul %0, %1, %cst {dimension_numbers = #tpu.dot_dimension_numbers<[1], [0], [0], [1], [0, 0, 1, 1], [], []>} : vector<256x128xbf16>, vector<128x512xbf16>, vector<256x512xf32> -> vector<256x512xf32>
    %c0_3 = arith.constant 0 : index
    %c0_4 = arith.constant 0 : index
    %3 = vector.load %arg4[%c0_3, %c0_4] : memref<1x512xf32, #tpu.memory_space<vmem>>, vector<1x512xf32>
    %4 = vector.broadcast %3 : vector<1x512xf32> to vector<256x512xf32>
    %5 = arith.addf %2, %4 : vector<256x512xf32>
    %cst_5 = arith.constant 0.000000e+00 : f32
    %6 = vector.broadcast %cst_5 : f32 to vector<256x512xf32>
    %7 = arith.maximumf %5, %6 : vector<256x512xf32>
    %8 = arith.truncf %7 : vector<256x512xf32> to vector<256x512xbf16>
    %c0_6 = arith.constant 0 : index
    %c0_7 = arith.constant 0 : index
    %9 = vector.load %arg8[%c0_6, %c0_7] : memref<256x512xbf16, #tpu.memory_space<vmem>>, vector<256x512xbf16>
    tpu.vector_store %arg8[%c0_6, %c0_7], %8 {strides = array<i32>} : memref<256x512xbf16, #tpu.memory_space<vmem>>, vector<256x512xbf16>,
    %c0_8 = arith.constant 0 : index
    %c0_9 = arith.constant 0 : index
    %10 = vector.load %arg8[%c0_8, %c0_9] : memref<256x512xbf16, #tpu.memory_space<vmem>>, vector<256x512xbf16>
    %c0_10 = arith.constant 0 : index
    %c0_11 = arith.constant 0 : index
    %11 = vector.load %arg5[%c0_10, %c0_11] : memref<512x128xbf16, #tpu.memory_space<vmem>>, vector<512x128xbf16>
    %cst_12 = arith.constant dense<0.000000e+00> : vector<256x128xf32>
    %12 = tpu.matmul %10, %11, %cst_12 {dimension_numbers = #tpu.dot_dimension_numbers<[1], [0], [0], [1], [0, 0, 1, 1], [], []>} : vector<256x512xbf16>, vector<512x128xbf16>, vector<256x128xf32> -> vector<256x128xf32>
    %c0_i32 = arith.constant 0 : i32
    %13 = arith.cmpi eq, %arg1, %c0_i32 : i32
    %14 = arith.extui %13 : i1 to i32
    %c0_i32_13 = arith.constant 0 : i32
    %15 = arith.cmpi ne, %14, %c0_i32_13 : i32
    scf.if %15 {
      %c0_17 = arith.constant 0 : index
      %c0_18 = arith.constant 0 : index
      %22 = vector.load %arg9[%c0_17, %c0_18] : memref<256x128xf32, #tpu.memory_space<vmem>>, vector<256x128xf32>
      tpu.vector_store %arg9[%c0_17, %c0_18], %12 {strides = array<i32>} : memref<256x128xf32, #tpu.memory_space<vmem>>, vector<256x128xf32>,
    } else {
    }
    %c0_i32_14 = arith.constant 0 : i32
    %16 = arith.cmpi sgt, %arg1, %c0_i32_14 : i32
    %17 = arith.extui %16 : i1 to i32
    %c0_i32_15 = arith.constant 0 : i32
    %18 = arith.cmpi ne, %17, %c0_i32_15 : i32
    scf.if %18 {
      %c0_17 = arith.constant 0 : index
      %c0_18 = arith.constant 0 : index
      %22 = vector.load %arg9[%c0_17, %c0_18] : memref<256x128xf32, #tpu.memory_space<vmem>>, vector<256x128xf32>
      %23 = arith.addf %22, %12 : vector<256x128xf32>
      %c0_19 = arith.constant 0 : index
      %c0_20 = arith.constant 0 : index
      %24 = vector.load %arg9[%c0_19, %c0_20] : memref<256x128xf32, #tpu.memory_space<vmem>>, vector<256x128xf32>
      tpu.vector_store %arg9[%c0_19, %c0_20], %23 {strides = array<i32>} : memref<256x128xf32, #tpu.memory_space<vmem>>, vector<256x128xf32>,
    } else {
    }
    %c1_i32 = arith.constant 1 : i32
    %19 = arith.cmpi eq, %arg1, %c1_i32 : i32
    %20 = arith.extui %19 : i1 to i32
    %c0_i32_16 = arith.constant 0 : i32
    %21 = arith.cmpi ne, %20, %c0_i32_16 : i32
    scf.if %21 {
      %c0_17 = arith.constant 0 : index
      %c0_18 = arith.constant 0 : index
      %22 = vector.load %arg9[%c0_17, %c0_18] : memref<256x128xf32, #tpu.memory_space<vmem>>, vector<256x128xf32>
      %c0_19 = arith.constant 0 : index
      %c0_20 = arith.constant 0 : index
      %23 = vector.load %arg6[%c0_19, %c0_20] : memref<1x128xf32, #tpu.memory_space<vmem>>, vector<1x128xf32>
      %24 = vector.broadcast %23 : vector<1x128xf32> to vector<256x128xf32>
      %25 = arith.addf %22, %24 : vector<256x128xf32>
      %c0_21 = arith.constant 0 : index
      %c0_22 = arith.constant 0 : index
      %26 = vector.load %arg7[%c0_21, %c0_22] : memref<256x128xf32, #tpu.memory_space<vmem>>, vector<256x128xf32>
      tpu.vector_store %arg7[%c0_21, %c0_22], %25 {strides = array<i32>} : memref<256x128xf32, #tpu.memory_space<vmem>>, vector<256x128xf32>,
    } else {
    }
    return
  }
  func.func @transform_0(%arg0: i32, %arg1: i32) -> (i32, i32) {
    %c0_i32 = arith.constant 0 : i32
    %c0_i32_0 = arith.constant 0 : i32
    return %arg0, %c0_i32 : i32, i32
  }
  func.func @transform_1(%arg0: i32, %arg1: i32) -> (i32, i32) {
    %c0_i32 = arith.constant 0 : i32
    %c0_i32_0 = arith.constant 0 : i32
    return %c0_i32, %arg1 : i32, i32
  }
  func.func @transform_2(%arg0: i32, %arg1: i32) -> (i32, i32) {
    %c0_i32 = arith.constant 0 : i32
    %c0_i32_0 = arith.constant 0 : i32
    return %c0_i32, %arg1 : i32, i32
  }
  func.func @transform_3(%arg0: i32, %arg1: i32) -> (i32, i32) {
    %c0_i32 = arith.constant 0 : i32
    %c0_i32_0 = arith.constant 0 : i32
    return %arg1, %c0_i32 : i32, i32
  }
  func.func @transform_4(%arg0: i32, %arg1: i32) -> (i32, i32) {
    %c0_i32 = arith.constant 0 : i32
    %c0_i32_0 = arith.constant 0 : i32
    %c0_i32_1 = arith.constant 0 : i32
    return %c0_i32, %c0_i32_0 : i32, i32
  }
  func.func @transform_5(%arg0: i32, %arg1: i32) -> (i32, i32) {
    %c0_i32 = arith.constant 0 : i32
    %c0_i32_0 = arith.constant 0 : i32
    return %arg0, %c0_i32 : i32, i32
  }
  func.func @transform_6(%arg0: i32, %arg1: i32) -> (i32, i32) {
    %c0_i32 = arith.constant 0 : i32
    return %arg0, %arg1 : i32, i32
  }
}

</mosaic_0001>

<bundles_post_ra>
// kernel: tpu_custom_call.1
= control target key start
LH: loop header
LB: loop body
LE: loop exit
PB: predicated region body
PF: predicated region fallthrough
CT: control target
= control target key end

     0   :  { %s5457_s0 = inlined_call_operand.hbm [shape: bf16[512,128], index: 0, kind: input, shape index: {}]   ;;  %s5458_s1 = inlined_call_operand.hbm [shape: bf16[128,1024], index: 1, kind: input, shape index: {}]   ;;  %s5459_s2 = inlined_call_operand.hbm [shape: f32[1,1024], index: 2, kind: input, shape index: {}]   ;;  %s5460_s3 = inlined_call_operand.hbm [shape: bf16[1024,128], index: 3, kind: input, shape index: {}]   ;;  %s5461_s4 = inlined_call_operand.vmem [shape: f32[1,128], index: 4, kind: input, shape index: {}]   ;;  %s5462_s5 = inlined_call_operand.hbm [shape: f32[512,128], index: 5, kind: output, shape index: {0}]   ;;  %s5463_s6 = inlined_call_operand.hbm [shape: bf16[512,1024], index: 6, kind: output, shape index: {1}]  }
   0x1   :  { %5489 = sst [smem:[#allocation34_spill]] %s5457_s0 }
   0x2   :  { %5490 = sst [smem:[#allocation35_spill]] %s5458_s1 }
   0x3   :  { %5491 = sst [smem:[#allocation36_spill]] %s5461_s4 }
   0x4   :  { %5492 = sst [smem:[#allocation37_spill]] %s5462_s5 }
   0x5   :  { %5493 = sst [smem:[#allocation38_spill]] %s5463_s6 }
   0x6   :  { %12 = vsyncpa [#allocation4], 0 }
   0x7   :  { %14 = vsyncpa [#allocation4 + $0x1], 0 }
   0x8   :  { %15 = vsyncpa [#allocation7], 0 }
   0x9   :  { %17 = vsyncpa [#allocation7 + $0x1], 0 }
   0xa   :  { %18 = vsyncpa [#allocation10], 0 }
   0xb   :  { %20 = vsyncpa [#allocation10 + $0x1], 0 }
   0xc   :  { %21 = vsyncpa [#allocation5], 0 }
   0xd   :  { %23 = vsyncpa [#allocation5 + $0x1], 0 }
   0xe   :  { %24 = vsyncpa [#allocation13], 0 }
   0xf   :  { %26 = vsyncpa [#allocation13 + $0x1], 0  ;;  %s4366_s21 = smov 0   ;;  %s4368_s22 = smov 0  }
  0x10   :  { %s4370_s23 = smov 0   ;;  %s4372_s24 = smov 0  }
  0x11   :  { %s4374_s25 = smov 0   ;;  %s4376_s26 = smov 0  }
  0x12   :  { %s4378_s27 = smov 0   ;;  %s4380_s28 = smov 0  }
  0x13   :  { %s4382_s29 = smov 0   ;;  %s4384_s30 = smov 0  }
  0x14   :  { %s4386_s7 = smov 0   ;;  %s4388_s8 = smov 0  }
  0x15   :  { %s4390_s9 = smov 0   ;;  %s4392_s10 = smov 0  }
  0x16 LB: > { %5494 = sst [smem:[#allocation19_spill]] %s4268_s23  ;;  %p5469_p0 = scmp.eq.s32.totalorder %s4312_s10, 0  ;;  %s4312_s10 = sphi %s4392_s10, %s32_s10   ;;  %s4308_s9 = sphi %s4390_s9, %s5558_s9   ;;  %s4304_s8 = sphi %s4388_s8, %s5568_s8   ;;  %s4300_s7 = sphi %s4386_s7, %s5567_s7   ;;  %s4296_s30 = sphi %s4384_s30, %s5566_s30   ;;  %s4292_s29 = sphi %s4382_s29, %s5555_s29   ;;  %s4288_s28 = sphi %s4380_s28, %s5565_s28   ;;  %s4284_s27 = sphi %s4378_s27, %s5564_s27   ;;  %s4280_s26 = sphi %s4376_s26, %s5553_s26   ;;  %s4276_s25 = sphi %s4374_s25, %s5563_s25   ;;  %s4272_s24 = sphi %s4372_s24, %s5562_s24   ;;  %s4268_s23 = sphi %s4370_s23, %s5551_s23   ;;  %s4264_s22 = sphi %s4368_s22, %s5561_s22   ;;  %s4260_s21 = sphi %s4366_s21, %s5560_s21  }
  0x17   : > { %5495 = sst [smem:[#allocation20_spill]] %s4280_s26  ;;  %p84_p1 = scmp.ne.s32.totalorder %s4280_s26, %s4276_s25 }
  0x18   : > { %5496 = sst [smem:[#allocation21_spill]] %s4284_s27  ;;  %p5468_p3 = scmp.lt.s32.totalorder %s4312_s10, 4 }
  0x19   : > { %5497 = sst [smem:[#allocation22_spill]] %s4292_s29  ;;  %p86_p4 = por %p84_p1, %p5469_p0 }
  0x1a   : > { %5498 = sst [smem:[#allocation23_spill]] %s4296_s30  ;;  %s265_s12 = sand.u32 1, %s4312_s10  }
  0x1b   : > { %5499 = sst [smem:[#allocation24_spill]] %s4300_s7  ;;  %s4447_s13 = sand.u32 1, %s4280_s26  }
  0x1c   : > { %5500 = sst [smem:[#allocation25_spill]] %s4308_s9  ;;  %s5465_s14 = sshll.u32 %s4447_s13, 8 }
  0x1d   : > { %s3396_s15 = sshll.u32 %s4304_s8, 8  ;;  %s5501_s1 = sld [smem:[#allocation35_spill]] }
  0x1e   : > { %s269_s19 = scalar_lea.vmem [#allocation6], %s5465_s14  ;;  %p4460_p5 = pnand %p5468_p3, %p86_p4 }
  0x1f   : > { %s276_s20 = sshll.u32 %s269_s19, 4  ;;  %s4467_s6 = scalar_lea.sflag [#allocation7], %s265_s12  ;;  %s4464_s20 = int_to_ptr.vmem [resolvable:$true] %s276_s20 }
  0x20   : > { %s5502_s11 = scalar_select %p4460_p5, 1, 0 }
  0x21   : > { %p4473_p8 = pneg %p4460_p5 }
  0x23   : > { %s4454_s18 = scalar_lea.hbm %s5501_s1, %s3396_s15  ;;  %s4011_s14 = scalar_lea.hbm %s5501_s1, 8192 }
  0x24   : > { %s4006_s15 = scalar_lea.hbm %s4454_s18, 4096  ;;  %p4012_p11 = scmp.lt.u32.totalorder %s4454_s18, %s5501_s1 }
  0x25   : > { %p4007_p7 = scmp.ne.s32.totalorder %s4454_s18, %s4006_s15  ;;  %p4013_p12 = scmp.lt.u32.totalorder %s4011_s14, %s4006_s15 }
  0x26   : > { %p4015_p1 = scmp.lt.u32.totalorder %s4006_s15, %s4454_s18 }
  0x27   : > { %p4009_p9 = pnand %p4473_p8, %p4007_p7  ;;  %p4014_p13 = por %p4013_p12, %p4012_p11 }
  0x29   : > { %p4010_p10 = pneg %p4009_p9  ;;  %p4016_p4 = por %p4015_p1, %p4014_p13 }
  0x2b   : > { %p4017_p3 = pnand %p4016_p4, %p4010_p10 }
  0x2d   : > { %4020 = shalt.err (!%p4017_p3)
}
  0x2e   : > { %s4021_s12 = scalar_lea.vmem %s4464_s20, 4096  ;;  %s4314_s17 = smov [#allocation6]  }
  0x2f   : > { %p4022_p7 = scmp.ne.s32.totalorder %s4464_s20, %s4021_s12  ;;  %s4026_s19 = sshll.u32 %s4314_s17, 4  ;;  %s4027_s19 = int_to_ptr.vmem [resolvable:$false] %s4026_s19 }
  0x30   : > { %s4028_s5 = scalar_lea.vmem %s4027_s19, 8192  ;;  %p4029_p0 = scmp.lt.s32.totalorder %s4464_s20, %s4027_s19 }
  0x31   : > { %p4024_p9 = pnand %p4022_p7, %p4473_p8  ;;  %p4030_p6 = scmp.lt.s32.totalorder %s4028_s5, %s4021_s12 }
  0x33   : > { %p4025_p2 = pneg %p4024_p9  ;;  %p4031_p11 = por %p4030_p6, %p4029_p0 }
  0x35   : > { %p4032_p12 = pnand %p4031_p11, %p4025_p2 }
  0x37   : > { %4035 = shalt.err (!%p4032_p12)
}
  0x38   : > { %s4315_s7 = smov 512   ;;  %s4316_s14 = smov 256  }
  0x39   : > { %s4317_s15 = smov 16   ;;  %p324_p0 = scmp.lt.s32.totalorder %s4312_s10, 5 }
  0x3a   : > { %3707 = dma.hbm_to_vmem [thread:$0]  (!%p4460_p5), %s4454_s18, 4096, %s4464_s20, %s4467_s6, %s4315_s7, %s4316_s14, %s4317_s15  }
  0x3b   : > { %p5504_p2 = scmp.ge.s32.totalorder %s4312_s10, 1  ;;  %s4505_s17 = sadd.s32 4294967295, %s4312_s10  }
  0x3c   : > { %s3151_s19 = sadd.s32 4294967294, %s4312_s10   ;;  %s41_s5 = sadd.s32 1, %s4304_s8 }
  0x3d   : > { %p4500_p3 = pnand %p5504_p2, %p324_p0  ;;  %s44_s1 = sadd.s32 1, %s4308_s9 }
  0x3e   : > { %p42_p6 = scmp.ge.s32.totalorder %s41_s5, 2  ;;  %s51_s18 = sadd.s32 1, %s4292_s29 }
  0x3f   : > { %s5505_s12 = scalar_select %p4500_p3, 1, 0 }
  0x40   : > { %p58_p10 = scmp.ne.s32.totalorder %s4292_s29, %s4288_s28  ;;  %p5471_p13 = scmp.ne.s32.totalorder %s4288_s28, %s4284_s27 }
  0x41   : > { %5506 = sst [smem:[#allocation26_spill]] %s5505_s12  ;;  %s5570_s5 = smov (%p42_p6, %s41_s5), 0 }
  0x42   : > { %5507 = sst [smem:[#allocation27_spill]] %s5570_s5  ;;  %s5572_s1 = smov (!%p42_p6, %s44_s1), %s4308_s9 }
  0x43   : > { %p5508_p1 = scmp.eq.s32.totalorder %s4312_s10, 0  ;;  %p65_p7 = scmp.eq.s32.totalorder %s4505_s17, 0 }
  0x44   : > { %p46_p9 = scmp.ge.s32.totalorder %s5572_s1, 2  ;;  %s74_s7 = ssub.s32 %s4304_s8, %s5570_s5 }
  0x45   : > { %p4523_p4 = por %p5508_p1, %p58_p10  ;;  %p4533_p11 = por %p65_p7, %p5471_p13 }
  0x46   : > { %p75_p12 = scmp.eq.s32.totalorder %s74_s7, 0  ;;  %s5574_s1 = smov (%p46_p9, %s5572_s1), 0 }
  0x47   : > { %s5510_s14 = scalar_select %p4533_p11, 1, 0 }
  0x48   : > { %5512 = sst [smem:[#allocation29_spill]] %s5574_s1  ;;  %s5513_s15 = sadd.s32 1, %s4280_s26 }
  0x49   : > { %5511 = sst [smem:[#allocation28_spill]] %s5510_s14  ;;  %s48_s30 = ssub.s32 %s4308_s9, %s5574_s1 }
  0x4a   : > { %s4542_s4 = scalar_select %p75_p12, %s4280_s26, %s5513_s15  }
  0x4b   : > { %p5515_p0 = scmp.ne.s32.totalorder %s4276_s25, %s4272_s24  ;;  %p49_p6 = scmp.eq.s32.totalorder %s48_s30, 0 }
  0x4c   : > { %5514 = sst [smem:[#allocation30_spill]] %s4542_s4  ;;  %p187_p1 = scmp.eq.s32.totalorder %s4505_s17, 3 }
  0x4d   : > { %p4549_p2 = por %p5515_p0, %p65_p7  ;;  %p193_p13 = scmp.eq.s32.totalorder %s3151_s19, 3 }
  0x4e   : > { %s201_s14 = sor.u32 %s74_s7, %s48_s30  ;;  %p4560_p9 = por %p187_p1, %p58_p10 }
  0x4f   : > { %s5516_s5 = scalar_select %p4549_p2, 1, 0 }
  0x50   : > { %s4555_s12 = scalar_select %p49_p6, %s4292_s29, %s51_s18  }
  0x51   : > { %s5518_s15 = scalar_select %p4560_p9, 1, 0 }
  0x52   : > { %5517 = sst [smem:[#allocation31_spill]] %s4555_s12  ;;  %p5519_p12 = scmp.ne.s32.totalorder %s4288_s28, %s4284_s27 }
  0x53   : > { %p202_p7 = scmp.eq.s32.totalorder %s201_s14, 0  ;;  %s204_s1 = sadd.s32 1, %s4268_s23 }
  0x54   : > { %p4567_p11 = por %p193_p13, %p5519_p12  ;;  %p214_p0 = scmp.ne.s32.totalorder %s4268_s23, %s4264_s22 }
  0x55   : > { %p220_p2 = scmp.ne.s32.totalorder %s4264_s22, %s4260_s21  ;;  %s244_s7 = sand.u32 1, %s4292_s29  }
  0x56   : > { %s5520_s24 = scalar_select %p4567_p11, 1, 0 }
  0x57   : > { %s4577_s19 = scalar_select %p202_p7, %s4268_s23, %s204_s1  }
  0x58   : > { %p4579_p6 = por %p214_p0, %p187_p1  ;;  %p4583_p3 = por %p220_p2, %p193_p13 }
  0x59   : > { %5521 = sst [smem:[#allocation32_spill]] %s4577_s19  ;;  %s3395_s12 = sshll.u32 %s4308_s9, 11 }
  0x5a   : > { %s5522_s30 = scalar_select %p4579_p6, 1, 0 }
  0x5b   : > { %s5523_s18 = scalar_select %p4583_p3, 1, 0 }
  0x5c   : > { %s3154_s4 = sshll.u32 %s244_s7, 7  ;;  %s5525_s0 = sld [smem:[#allocation34_spill]] }
  0x5d   : > { %5524 = sst [smem:[#allocation33_spill]] %s5523_s18  ;;  %s248_s1 = scalar_lea.vmem [#allocation3], %s3154_s4 }
  0x5e   : > { %s255_s19 = sshll.u32 %s248_s1, 4  ;;  %p5526_p10 = scmp.lt.s32.totalorder %s4312_s10, 4  ;;  %s4602_s19 = int_to_ptr.vmem [resolvable:$true] %s255_s19 }
  0x5f   : > { %s4604_s9 = scalar_lea.sflag [#allocation4], %s244_s7 }
  0x60   : > { %p4598_p13 = pnand %p5526_p10, %p4523_p4 }
  0x62   : > { %s4592_s14 = scalar_lea.hbm %s5525_s0, %s3395_s12  ;;  %p4038_p1 = pneg %p4598_p13 }
  0x63   : > { %s4036_s26 = scalar_lea.hbm %s4592_s14, 2048  ;;  %s4041_s12 = scalar_lea.hbm %s5525_s0, 4096 }
  0x64   : > { %p4037_p2 = scmp.ne.s32.totalorder %s4592_s14, %s4036_s26  ;;  %p4042_p4 = scmp.lt.u32.totalorder %s4592_s14, %s5525_s0 }
  0x65   : > { %p4043_p0 = scmp.lt.u32.totalorder %s4041_s12, %s4036_s26  ;;  %p4045_p3 = scmp.lt.u32.totalorder %s4036_s26, %s4592_s14 }
  0x66   : > { %p4039_p12 = pnand %p4038_p1, %p4037_p2 }
  0x67   : > { %p4044_p10 = por %p4043_p0, %p4042_p4 }
  0x68   : > { %p4040_p7 = pneg %p4039_p12 }
  0x69   : > { %p4046_p11 = por %p4045_p3, %p4044_p10 }
  0x6b   : > { %p4047_p6 = pnand %p4046_p11, %p4040_p7 }
  0x6d   : > { %4050 = shalt.err (!%p4047_p6)
}
  0x6e   : > { %s4051_s7 = scalar_lea.vmem %s4602_s19, 2048  ;;  %s4318_s4 = smov [#allocation3]  }
  0x6f   : > { %p4052_p2 = scmp.ne.s32.totalorder %s4602_s19, %s4051_s7  ;;  %s4056_s27 = sshll.u32 %s4318_s4, 4  ;;  %s4057_s27 = int_to_ptr.vmem [resolvable:$false] %s4056_s27 }
  0x70   : > { %s4058_s20 = scalar_lea.vmem %s4057_s27, 4096  ;;  %p4059_p5 = scmp.lt.s32.totalorder %s4602_s19, %s4057_s27 }
  0x71   : > { %p4054_p12 = pnand %p4052_p2, %p4038_p1  ;;  %p4060_p4 = scmp.lt.s32.totalorder %s4058_s20, %s4051_s7 }
  0x73   : > { %p4055_p9 = pneg %p4054_p12  ;;  %p4061_p0 = por %p4060_p4, %p4059_p5 }
  0x75   : > { %p4062_p3 = pnand %p4061_p0, %p4055_p9 }
  0x77   : > { %4065 = shalt.err (!%p4062_p3)
}
  0x78   : > { %s4319_s26 = smov 64   ;;  %s4320_s12 = smov 4  }
  0x79   : > { %3704 = dma.hbm_to_vmem [thread:$0]  (!%p4598_p13), %s4592_s14, 2048, %s4602_s19, %s4604_s9, %s4319_s26, %s4319_s26, %s4320_s12  }
  0x7a   : > { %s3160_s1 = sshll.u32 %s4447_s13, 2  ;;  %s3397_s4 = sshll.u32 %s4304_s8, 6 }
  0x7b   : > { %s4640_s20 = scalar_lea.hbm %s5459_s2, %s3397_s4  ;;  %s290_s0 = scalar_lea.vmem [#allocation8], %s3160_s1 }
  0x7c   : > { %s298_s29 = sshll.u32 %s290_s0, 4  ;;  %s4066_s18 = scalar_lea.hbm %s4640_s20, 64  ;;  %s299_s29 = int_to_ptr.vmem [resolvable:$true] %s298_s29 }
  0x7d   : > { %p4067_p5 = scmp.ne.s32.totalorder %s4640_s20, %s4066_s18  ;;  %s4071_s19 = scalar_lea.hbm %s5459_s2, 128 }
  0x7e   : > { %p4072_p6 = scmp.lt.u32.totalorder %s4640_s20, %s5459_s2  ;;  %p4073_p13 = scmp.lt.u32.totalorder %s4071_s19, %s4066_s18 }
  0x7f   : > { %p4069_p11 = pnand %p4067_p5, %p4473_p8  ;;  %p4075_p7 = scmp.lt.u32.totalorder %s4066_s18, %s4640_s20 }
  0x80   : > { %p4074_p1 = por %p4073_p13, %p4072_p6 }
  0x81   : > { %p4070_p9 = pneg %p4069_p11 }
  0x82   : > { %p4076_p10 = por %p4075_p7, %p4074_p1 }
  0x84   : > { %p4077_p2 = pnand %p4076_p10, %p4070_p9 }
  0x86   : > { %4080 = shalt.err (!%p4077_p2)
}
  0x87   : > { %s4081_s0 = scalar_lea.vmem %s299_s29, 64  ;;  %s4321_s1 = smov [#allocation8]  }
  0x88   : > { %p4082_p12 = scmp.ne.s32.totalorder %s299_s29, %s4081_s0  ;;  %s4086_s4 = sshll.u32 %s4321_s1, 4  ;;  %s4087_s4 = int_to_ptr.vmem [resolvable:$false] %s4086_s4 }
  0x89   : > { %s4088_s27 = scalar_lea.vmem %s4087_s4, 128  ;;  %p4089_p3 = scmp.lt.s32.totalorder %s299_s29, %s4087_s4 }
  0x8a   : > { %p4084_p4 = pnand %p4082_p12, %p4473_p8  ;;  %p4090_p5 = scmp.lt.s32.totalorder %s4088_s27, %s4081_s0 }
  0x8c   : > { %p4085_p0 = pneg %p4084_p4  ;;  %p4091_p11 = por %p4090_p5, %p4089_p3 }
  0x8e   : > { %p4092_p6 = pnand %p4091_p11, %p4085_p0 }
  0x90   : > { %4095 = shalt.err (!%p4092_p6)
}
  0x91   : > { %p5528_p13 = scmp.ne.s32.totalorder %s5502_s11, 0  ;;  %s3398_s18 = sshll.u32 %s4304_s8, 12 }
  0x92   : > { %s5529_s23 = sshll.u32 %s4447_s13, 8  ;;  %s4666_s0 = scalar_lea.hbm %s5460_s3, %s3398_s18 }
  0x93   : > { %3710 = dma.hbm_to_vmem [thread:$0]  (!%p5528_p13), %s4640_s20, 64, %s299_s29, %s4467_s6  }
  0x94   : > { %s309_s9 = scalar_lea.vmem [#allocation9], %s5529_s23  ;;  %s306_s1 = scalar_lea.sflag [#allocation10], %s4447_s13 }
  0x95   : > { %s316_s19 = sshll.u32 %s309_s9, 4  ;;  %s4096_s4 = scalar_lea.hbm %s4666_s0, 4096  ;;  %s4668_s19 = int_to_ptr.vmem [resolvable:$true] %s316_s19 }
  0x96   : > { %p4097_p9 = scmp.ne.s32.totalorder %s4666_s0, %s4096_s4  ;;  %s4101_s20 = scalar_lea.hbm %s5460_s3, 8192 }
  0x97   : > { %p4102_p10 = scmp.lt.u32.totalorder %s4666_s0, %s5460_s3  ;;  %p4103_p2 = scmp.lt.u32.totalorder %s4101_s20, %s4096_s4 }
  0x98   : > { %p4099_p1 = pnand %p4097_p9, %p4473_p8  ;;  %p4105_p4 = scmp.lt.u32.totalorder %s4096_s4, %s4666_s0 }
  0x99   : > { %p4104_p12 = por %p4103_p2, %p4102_p10 }
  0x9a   : > { %p4100_p7 = pneg %p4099_p1 }
  0x9b   : > { %p4106_p0 = por %p4105_p4, %p4104_p12 }
  0x9d   : > { %p4107_p3 = pnand %p4106_p0, %p4100_p7 }
  0x9f   : > { %4110 = shalt.err (!%p4107_p3)
}
  0xa0   : > { %s4111_s18 = scalar_lea.vmem %s4668_s19, 4096  ;;  %s4322_s9 = smov [#allocation9]  }
  0xa1   : > { %p4112_p5 = scmp.ne.s32.totalorder %s4668_s19, %s4111_s18  ;;  %s4116_s14 = sshll.u32 %s4322_s9, 4  ;;  %s4117_s14 = int_to_ptr.vmem [resolvable:$false] %s4116_s14 }
  0xa2   : > { %s4118_s7 = scalar_lea.vmem %s4117_s14, 8192  ;;  %p4119_p9 = scmp.lt.s32.totalorder %s4668_s19, %s4117_s14 }
  0xa3   : > { %p4114_p11 = pnand %p4112_p5, %p4473_p8  ;;  %p4120_p1 = scmp.lt.s32.totalorder %s4118_s7, %s4111_s18 }
  0xa5   : > { %p4115_p6 = pneg %p4114_p11  ;;  %p4121_p10 = por %p4120_p1, %p4119_p9 }
  0xa7   : > { %p4122_p2 = pnand %p4121_p10, %p4115_p6 }
  0xa9   : > { %4125 = shalt.err (!%p4122_p2)
}
  0xaa   : > { %3713 = dma.hbm_to_vmem [thread:$0]  (!%p5528_p13), %s4666_s0, 4096, %s4668_s19, %s306_s1, %s4319_s26, %s4319_s26, %s4320_s12  }
  0xab   : > { %s5530_s16 = sld [smem:[#allocation26_spill]] }
  0xb1   : > { %p5531_p8 = scmp.ne.s32.totalorder %s5530_s16, 0 }
  0xb2   : > { %s5532_s4 = sld [smem:[#allocation28_spill]] (!%p5531_p8)  ;;  %s4700_s6 = sand.u32 (!%p5531_p8), 1, %s4288_s28  }
  0xb3   : > { %328 = sbr.rel (%p5531_p8) target bundleno = 911 (0x38f), region = 40  ;;  %s3167_s29 = sshll.u32 (!%p5531_p8), %s4700_s6, 7 }
  0xb4   : > { %s331_s20 = scalar_lea.sflag (!%p5531_p8), [#allocation4], %s4700_s6  ;;  %s4704_s11 = scalar_lea.vmem (!%p5531_p8), [#allocation3], %s3167_s29 }
  0xb8   : > { %p5533_p7 = scmp.ne.s32.totalorder (!%p5531_p8), %s5532_s4, 0 }
  0xba   : > { %4239 = dma.done.wait (%p5533_p7), %s331_s20, 2048  }
  0xbb   : > { %4241 = vsyncadd (%p5533_p7), %s331_s20, 4294965248  ;;  %s339_s13 = sand.u32 1, %s4505_s17   ;;  %s341_s26 = sand.u32 1, %s4276_s25  }
  0xbc   : > { %s3168_s12 = sshll.u32 %s341_s26, 8  ;;  %s340_s19 = scalar_lea.sflag [#allocation7], %s339_s13 }
  0xbd   : > { %s4712_s0 = scalar_lea.vmem [#allocation6], %s3168_s12  ;;  %p5534_p13 = scmp.ne.s32.totalorder %s5516_s5, 0 }
  0xbf   : > { %4243 = dma.done.wait (%p5534_p13), %s340_s19, 4160  }
  0xc0   : > { %4245 = vsyncadd (%p5534_p13), %s340_s19, 4294963136  ;;  %s3169_s1 = sshll.u32 %s341_s26, 2  ;;  %s358_s23 = scalar_lea.sflag [#allocation10], %s341_s26 }
  0xc1   : > { %s4718_s27 = scalar_lea.vmem [#allocation8], %s3169_s1  ;;  %s4720_s18 = scalar_lea.vmem [#allocation9], %s3168_s12 }
  0xc2   : > { %4247 = dma.done.wait (%p5534_p13), %s358_s23, 4096  }
  0xc3   : > { %4249 = vsyncadd (%p5534_p13), %s358_s23, 4294963200  ;;  %s3171_s17 = sshll.u32 %s4700_s6, 8  ;;  %v4323_v0 = vmov 0   ;;  %v3846_v1 = vld [vmem:[%s4712_s0 + $0x4] ss:$16 sps:$4 sm:$0xff]   ;;  %v3907_v34 = vld [vmem:[%s4720_s18 + $0x40] sm:$0xff]  }
  0xc4   : > { %792 = vmatprep.mubr.bf16.mxu0 %v4323_v0  ;;  %985 = vmatprep.mubr.bf16.mxu1 %v4323_v0  ;;  %v3848_v2 = vld [vmem:[%s4712_s0 + $0xc] ss:$16 sps:$4 sm:$0xff]   ;;  %v3850_v3 = vld [vmem:[%s4712_s0] ss:$16 sps:$4 sm:$0xff]   ;;  %v3851_v4 = vld [vmem:[%s4712_s0 + $0x8] ss:$16 sps:$4 sm:$0xff]  }
  0xc5   : > { %760 = vmatprep.subr.bf16.mxu0 %v3846_v1  ;;  %953 = vmatprep.subr.bf16.mxu1 %v3848_v2  ;;  %v3852_v5 = vld [vmem:[%s4712_s0 + $0x24] ss:$16 sps:$4 sm:$0xff]   ;;  %v3854_v6 = vld [vmem:[%s4712_s0 + $0x2c] ss:$16 sps:$4 sm:$0xff]   ;;  %v3856_v7 = vld [vmem:[%s4712_s0 + $0x20] ss:$16 sps:$4 sm:$0xff]  }
  0xc6   : > { %761 = vmatpush1.bf16.msra.mxu0 %v3850_v3  ;;  %954 = vmatpush1.bf16.msra.mxu1 %v3851_v4  ;;  %v3857_v8 = vld [vmem:[%s4712_s0 + $0x28] ss:$16 sps:$4 sm:$0xff]   ;;  %v3858_v9 = vld [vmem:[%s4712_s0 + $0x44] ss:$16 sps:$4 sm:$0xff]   ;;  %v3860_v10 = vld [vmem:[%s4712_s0 + $0x4c] ss:$16 sps:$4 sm:$0xff]  }
  0xc7   : > { %762 = vmatprep.subr.bf16.mxu0 %v3852_v5  ;;  %955 = vmatprep.subr.bf16.mxu1 %v3854_v6  ;;  %v3862_v11 = vld [vmem:[%s4712_s0 + $0x40] ss:$16 sps:$4 sm:$0xff]   ;;  %v3863_v12 = vld [vmem:[%s4712_s0 + $0x48] ss:$16 sps:$4 sm:$0xff]   ;;  %v3864_v13 = vld [vmem:[%s4712_s0 + $0x64] ss:$16 sps:$4 sm:$0xff]  }
  0xc8   : > { %v3866_v14 = vld [vmem:[%s4712_s0 + $0x6c] ss:$16 sps:$4 sm:$0xff]   ;;  %v3868_v15 = vld [vmem:[%s4712_s0 + $0x60] ss:$16 sps:$4 sm:$0xff]   ;;  %v3869_v16 = vld [vmem:[%s4712_s0 + $0x68] ss:$16 sps:$4 sm:$0xff]  }
  0xc9   : > { %v3870_v17 = vld [vmem:[%s4712_s0 + $0x84] ss:$16 sps:$4 sm:$0xff]   ;;  %v3872_v18 = vld [vmem:[%s4712_s0 + $0x8c] ss:$16 sps:$4 sm:$0xff]   ;;  %v3874_v19 = vld [vmem:[%s4712_s0 + $0x80] ss:$16 sps:$4 sm:$0xff]  }
  0xca   : > { %763 = vmatpush1.bf16.msra.mxu0 %v3856_v7  ;;  %956 = vmatpush1.bf16.msra.mxu1 %v3857_v8  ;;  %v3875_v20 = vld [vmem:[%s4712_s0 + $0x88] ss:$16 sps:$4 sm:$0xff]   ;;  %v3876_v21 = vld [vmem:[%s4712_s0 + $0xa4] ss:$16 sps:$4 sm:$0xff]   ;;  %v3878_v22 = vld [vmem:[%s4712_s0 + $0xac] ss:$16 sps:$4 sm:$0xff]  }
  0xcb   : > { %764 = vmatprep.subr.bf16.mxu0 %v3858_v9  ;;  %957 = vmatprep.subr.bf16.mxu1 %v3860_v10  ;;  %v3880_v23 = vld [vmem:[%s4712_s0 + $0xa0] ss:$16 sps:$4 sm:$0xff]   ;;  %v3881_v24 = vld [vmem:[%s4712_s0 + $0xa8] ss:$16 sps:$4 sm:$0xff]   ;;  %v3882_v25 = vld [vmem:[%s4712_s0 + $0xc4] ss:$16 sps:$4 sm:$0xff]  }
  0xcc   : > { %v3884_v26 = vld [vmem:[%s4712_s0 + $0xcc] ss:$16 sps:$4 sm:$0xff]   ;;  %v3886_v27 = vld [vmem:[%s4712_s0 + $0xc0] ss:$16 sps:$4 sm:$0xff]   ;;  %v3887_v28 = vld [vmem:[%s4712_s0 + $0xc8] ss:$16 sps:$4 sm:$0xff]  }
  0xcd   : > { %v3888_v29 = vld [vmem:[%s4712_s0 + $0xe4] ss:$16 sps:$4 sm:$0xff]   ;;  %v3890_v30 = vld [vmem:[%s4712_s0 + $0xec] ss:$16 sps:$4 sm:$0xff]   ;;  %v3892_v31 = vld [vmem:[%s4712_s0 + $0xe0] ss:$16 sps:$4 sm:$0xff]  }
  0xce   : > { %765 = vmatpush1.bf16.msra.mxu0 %v3862_v11  ;;  %958 = vmatpush1.bf16.msra.mxu1 %v3863_v12  ;;  %v3893_v32 = vld [vmem:[%s4712_s0 + $0xe8] ss:$16 sps:$4 sm:$0xff]   ;;  %v3894_v33 = vld [vmem:[%s4704_s11] sm:$0xff]   ;;  %v3913_v39 = vld [vmem:[%s4720_s18 + $0x48] sm:$0xff]   ;;  %s407_s5 = sand.u32 1, %s4264_s22   ;;  %s5195_s7 = scalar_lea.vmem [#allocation11], %s3171_s17 }
  0xcf   : > { %766 = vmatprep.subr.bf16.mxu0 %v3864_v13  ;;  %959 = vmatprep.subr.bf16.mxu1 %v3866_v14  ;;  %v3908_v35 = vld [vmem:[%s4720_s18 + $0xc0] sm:$0xff]   ;;  %v3914_v40 = vld [vmem:[%s4720_s18 + $0xc8] sm:$0xff]   ;;  %v3918_v44 = vld [vmem:[%s4720_s18 + $0x50] sm:$0xff]   ;;  %s3172_s9 = sshll.u32 %s407_s5, 9  ;;  %s5535_s16 = sld [smem:[#allocation23_spill]] }
  0xd0   : > { %v3895_v36 = vld [vmem:[%s4704_s11 + $0x8] sm:$0xff]   ;;  %v3916_v41 = vld [vmem:[%s4720_s18 + $0x8] sm:$0xff]   ;;  %v3919_v45 = vld [vmem:[%s4720_s18 + $0xd0] sm:$0xff]   ;;  %s4859_s14 = scalar_lea.vmem [#allocation12], %s3172_s9 }
  0xd1   : > { %v3910_v37 = vld [vmem:[%s4720_s18] sm:$0xff]   ;;  %v3896_v42 = vld [vmem:[%s4704_s11 + $0x10] sm:$0xff]   ;;  %v3920_v46 = vld [vmem:[%s4720_s18 + $0x10] sm:$0xff]  }
  0xd2   : > { %767 = vmatpush1.bf16.msra.mxu0 %v3868_v15  ;;  %960 = vmatpush1.bf16.msra.mxu1 %v3869_v16  ;;  %v3911_v38 = vld [vmem:[%s4720_s18 + $0x80] sm:$0xff]   ;;  %v3917_v43 = vld [vmem:[%s4720_s18 + $0x88] sm:$0xff]   ;;  %v3921_v47 = vld [vmem:[%s4720_s18 + $0x90] sm:$0xff]  }
  0xd3   : > { %768 = vmatprep.subr.bf16.mxu0 %v3870_v17  ;;  %961 = vmatprep.subr.bf16.mxu1 %v3872_v18  ;;  %v3922_v48 = vld [vmem:[%s4720_s18 + $0x58] sm:$0xff]   ;;  %v3897_v51 = vld [vmem:[%s4704_s11 + $0x18] sm:$0xff]   ;;  %v3926_v53 = vld [vmem:[%s4720_s18 + $0x60] sm:$0xff]   ;;  %v484_v18 = vlaneseq }
  0xd4   : > { %v3923_v49 = vld [vmem:[%s4720_s18 + $0xd8] sm:$0xff]   ;;  %v3927_v54 = vld [vmem:[%s4720_s18 + $0xe0] sm:$0xff]   ;;  %v3930_v57 = vld [vmem:[%s4720_s18 + $0x68] sm:$0xff]  }
  0xd5   : > { %v3924_v50 = vld [vmem:[%s4720_s18 + $0x18] sm:$0xff]   ;;  %v3928_v55 = vld [vmem:[%s4720_s18 + $0x20] sm:$0xff]   ;;  %v3931_v58 = vld [vmem:[%s4720_s18 + $0xe8] sm:$0xff]   ;;  %p3381_p12 = scmp.ne.s32.totalorder %s5535_s16, 0 }
  0xd6   : > { %769 = vmatpush1.bf16.msra.mxu0 %v3874_v19  ;;  %962 = vmatpush1.bf16.msra.mxu1 %v3875_v20  ;;  %v3925_v52 = vld [vmem:[%s4720_s18 + $0x98] sm:$0xff]   ;;  %v3929_v56 = vld [vmem:[%s4720_s18 + $0xa0] sm:$0xff]   ;;  %v3932_v59 = vld [vmem:[%s4720_s18 + $0x28] sm:$0xff]   ;;  %v485_v19 = vshrl.u32 %v484_v18, 7 }
  0xd7   : > { %770 = vmatprep.subr.bf16.mxu0 %v3876_v21  ;;  %963 = vmatprep.subr.bf16.mxu1 %v3878_v22  ;;  %v3898_v60 = vld [vmem:[%s4704_s11 + $0x20] sm:$0xff]   ;;  %v3933_v61 = vld [vmem:[%s4720_s18 + $0xa8] sm:$0xff]   ;;  %v3934_v62 = vld [vmem:[%s4720_s18 + $0x70] sm:$0xff]  }
  0xd8   : > { %v3935_v63 = vld [vmem:[%s4720_s18 + $0xf0] sm:$0xff]   ;;  %v3899_v3 = vld [vmem:[%s4704_s11 + $0x28] sm:$0xff]   ;;  %v3900_v4 = vld [vmem:[%s4704_s11 + $0x30] sm:$0xff]   ;;  %v486_v20 = vsub.s32 0, %v485_v19  ;;  %v494_v21 = vsub.s32 2, %v485_v19 }
  0xd9   : > { %v3936_v1 = vld [vmem:[%s4720_s18 + $0x30] sm:$0xff]   ;;  %v3902_v6 = vld [vmem:[%s4704_s11 + $0x40] sm:$0xff]   ;;  %v3903_v7 = vld [vmem:[%s4704_s11 + $0x48] sm:$0xff]  }
  0xda   : > { %771 = vmatpush1.bf16.msra.mxu0 %v3880_v23  ;;  %964 = vmatpush1.bf16.msra.mxu1 %v3881_v24  ;;  %v3937_v2 = vld [vmem:[%s4720_s18 + $0xb0] sm:$0xff]   ;;  %v3904_v8 = vld [vmem:[%s4704_s11 + $0x50] sm:$0xff]   ;;  %v3938_v10 = vld [vmem:[%s4720_s18 + $0x78] sm:$0xff]   ;;  %v490_v23 = vsub.s32 1, %v485_v19  ;;  %v498_v24 = vsub.s32 3, %v485_v19 }
  0xdb   : > { %772 = vmatprep.subr.bf16.mxu0 %v3882_v25  ;;  %965 = vmatprep.subr.bf16.mxu1 %v3884_v26  ;;  %v3901_v5 = vld [vmem:[%s4704_s11 + $0x38] sm:$0xff]   ;;  %v3939_v11 = vld [vmem:[%s4720_s18 + $0xf8] sm:$0xff]   ;;  %v3909_v15 = vld [vmem:[%s4704_s11 + $0x68] sm:$0xff]  }
  0xdc   : > { %v3905_v9 = vld [vmem:[%s4704_s11 + $0x58] sm:$0xff]   ;;  %v3940_v12 = vld [vmem:[%s4720_s18 + $0x38] sm:$0xff]   ;;  %v3912_v16 = vld [vmem:[%s4704_s11 + $0x70] sm:$0xff]  }
  0xdd   : > { %v3941_v13 = vld [vmem:[%s4720_s18 + $0xb8] sm:$0xff]   ;;  %v3915_v17 = vld [vmem:[%s4704_s11 + $0x78] sm:$0xff]  }
  0xde   : > { %773 = vmatpush1.bf16.msra.mxu0 %v3886_v27  ;;  %966 = vmatpush1.bf16.msra.mxu1 %v3887_v28  ;;  %v3906_v14 = vld [vmem:[%s4704_s11 + $0x60] sm:$0xff]  }
  0xdf   : > { %774 = vmatprep.subr.bf16.mxu0 %v3888_v29  ;;  %967 = vmatprep.subr.bf16.mxu1 %v3890_v30  ;;  %v482_v22 = vld [vmem:[%s4718_s27] sm:$0xf] }
  0xe0   : > { %v4840_v25 = vrot.slane %v482_v22, %v486_v20  ;;  %v4842_v26 = vrot.slane %v482_v22, %v494_v21  ;;  %v4844_v27 = vrot.slane %v482_v22, %v490_v23  ;;  %v4846_v28 = vrot.slane %v482_v22, %v498_v24 }
  0xe2   : > { %775 = vmatpush1.bf16.msra.mxu0 %v3892_v31  ;;  %968 = vmatpush1.bf16.msra.mxu1 %v3893_v32 }
  0xe3   : > { %3465 = vmatprep.subr.bf16.mxu0 %v3907_v34  ;;  %3577 = vmatprep.subr.bf16.mxu1 %v3908_v35 }
  0xe5   : > { %793 = vmatmul.mubr.bf16.vlgmr.msra.gmra.mrb[0].mxu0 %v3894_v33  ;;  %986 = vmatmul.mubr.bf16.vlgmr.msra.gmra.mrb[0].mxu1 %v3894_v33 }
  0xe6   : > { %802 = vmatprep.mubr.bf16.mxu0 %v4323_v0  ;;  %995 = vmatprep.mubr.bf16.mxu1 %v4323_v0 }
  0xe7   : > { %3466 = vmatpush3.bf16.msra.mxu0 %v3910_v37  ;;  %3578 = vmatpush3.bf16.msra.mxu1 %v3911_v38 }
  0xe8   : > { %3467 = vmatprep.subr.bf16.mxu0 %v3913_v39  ;;  %3579 = vmatprep.subr.bf16.mxu1 %v3914_v40 }
  0xeb   : > { %3468 = vmatpush3.bf16.msra.mxu0 %v3916_v41  ;;  %3580 = vmatpush3.bf16.msra.mxu1 %v3917_v43 }
  0xec   : > { %3469 = vmatprep.subr.bf16.mxu0 %v3918_v44  ;;  %3581 = vmatprep.subr.bf16.mxu1 %v3919_v45 }
  0xed   : > { %803 = vmatmul.mubr.bf16.gmra.mrb[4].mxu0 %v3895_v36  ;;  %996 = vmatmul.mubr.bf16.gmra.mrb[4].mxu1 %v3895_v36 }
  0xee   : > { %812 = vmatprep.mubr.bf16.mxu0 %v4323_v0  ;;  %1005 = vmatprep.mubr.bf16.mxu1 %v4323_v0 }
  0xef   : > { %3470 = vmatpush3.bf16.msra.mxu0 %v3920_v46  ;;  %3582 = vmatpush3.bf16.msra.mxu1 %v3921_v47 }
  0xf0   : > { %3471 = vmatprep.subr.bf16.mxu0 %v3922_v48  ;;  %3583 = vmatprep.subr.bf16.mxu1 %v3923_v49 }
  0xf3   : > { %3472 = vmatpush3.bf16.msra.mxu0 %v3924_v50  ;;  %3584 = vmatpush3.bf16.msra.mxu1 %v3925_v52 }
  0xf4   : > { %3473 = vmatprep.subr.bf16.mxu0 %v3926_v53  ;;  %3585 = vmatprep.subr.bf16.mxu1 %v3927_v54 }
  0xf5   : > { %813 = vmatmul.mubr.bf16.gmra.mrb[8].mxu0 %v3896_v42  ;;  %1006 = vmatmul.mubr.bf16.gmra.mrb[8].mxu1 %v3896_v42 }
  0xf6   : > { %822 = vmatprep.mubr.bf16.mxu0 %v4323_v0  ;;  %1015 = vmatprep.mubr.bf16.mxu1 %v4323_v0 }
  0xf7   : > { %3474 = vmatpush3.bf16.msra.mxu0 %v3928_v55  ;;  %3586 = vmatpush3.bf16.msra.mxu1 %v3929_v56 }
  0xf8   : > { %3475 = vmatprep.subr.bf16.mxu0 %v3930_v57  ;;  %3587 = vmatprep.subr.bf16.mxu1 %v3931_v58 }
  0xfb   : > { %3476 = vmatpush3.bf16.msra.mxu0 %v3932_v59  ;;  %3588 = vmatpush3.bf16.msra.mxu1 %v3933_v61 }
  0xfc   : > { %3477 = vmatprep.subr.bf16.mxu0 %v3934_v62  ;;  %3589 = vmatprep.subr.bf16.mxu1 %v3935_v63 }
  0xfd   : > { %823 = vmatmul.mubr.bf16.gmra.mrb[12].mxu0 %v3897_v51  ;;  %1016 = vmatmul.mubr.bf16.gmra.mrb[12].mxu1 %v3897_v51 }
  0xfe   : > { %832 = vmatprep.mubr.bf16.mxu0 %v4323_v0  ;;  %1025 = vmatprep.mubr.bf16.mxu1 %v4323_v0 }
  0xff   : > { %3478 = vmatpush3.bf16.msra.mxu0 %v3936_v1  ;;  %3590 = vmatpush3.bf16.msra.mxu1 %v3937_v2 }
 0x100   : > { %3479 = vmatprep.subr.bf16.mxu0 %v3938_v10  ;;  %3591 = vmatprep.subr.bf16.mxu1 %v3939_v11 }
 0x103   : > { %3480 = vmatpush3.bf16.msra.mxu0 %v3940_v12  ;;  %3592 = vmatpush3.bf16.msra.mxu1 %v3941_v13 }
 0x105   : > { %833 = vmatmul.mubr.bf16.gmra.mrb[16].mxu0 %v3898_v60  ;;  %1026 = vmatmul.mubr.bf16.gmra.mrb[16].mxu1 %v3898_v60 }
 0x106   : > { %842 = vmatprep.mubr.bf16.mxu0 %v4323_v0  ;;  %1035 = vmatprep.mubr.bf16.mxu1 %v4323_v0 }
 0x10d   : > { %843 = vmatmul.mubr.bf16.gmra.mrb[20].mxu0 %v3899_v3  ;;  %1036 = vmatmul.mubr.bf16.gmra.mrb[20].mxu1 %v3899_v3 }
 0x10e   : > { %852 = vmatprep.mubr.bf16.mxu0 %v4323_v0  ;;  %1045 = vmatprep.mubr.bf16.mxu1 %v4323_v0 }
 0x115   : > { %853 = vmatmul.mubr.bf16.gmra.mrb[24].mxu0 %v3900_v4  ;;  %1046 = vmatmul.mubr.bf16.gmra.mrb[24].mxu1 %v3900_v4 }
 0x116   : > { %862 = vmatprep.mubr.bf16.mxu0 %v4323_v0  ;;  %1055 = vmatprep.mubr.bf16.mxu1 %v4323_v0 }
 0x11d   : > { %863 = vmatmul.mubr.bf16.gmra.mrb[28].mxu0 %v3901_v5  ;;  %1056 = vmatmul.mubr.bf16.gmra.mrb[28].mxu1 %v3901_v5 }
 0x11e   : > { %872 = vmatprep.mubr.bf16.mxu0 %v4323_v0  ;;  %1065 = vmatprep.mubr.bf16.mxu1 %v4323_v0 }
 0x125   : > { %873 = vmatmul.mubr.bf16.gmra.mrb[32].mxu0 %v3902_v6  ;;  %1066 = vmatmul.mubr.bf16.gmra.mrb[32].mxu1 %v3902_v6 }
 0x126   : > { %882 = vmatprep.mubr.bf16.mxu0 %v4323_v0  ;;  %1075 = vmatprep.mubr.bf16.mxu1 %v4323_v0 }
 0x12d   : > { %883 = vmatmul.mubr.bf16.gmra.mrb[36].mxu0 %v3903_v7  ;;  %1076 = vmatmul.mubr.bf16.gmra.mrb[36].mxu1 %v3903_v7 }
 0x12e   : > { %892 = vmatprep.mubr.bf16.mxu0 %v4323_v0  ;;  %1085 = vmatprep.mubr.bf16.mxu1 %v4323_v0 }
 0x135   : > { %893 = vmatmul.mubr.bf16.gmra.mrb[40].mxu0 %v3904_v8  ;;  %1086 = vmatmul.mubr.bf16.gmra.mrb[40].mxu1 %v3904_v8 }
 0x136   : > { %902 = vmatprep.mubr.bf16.mxu0 %v4323_v0  ;;  %1095 = vmatprep.mubr.bf16.mxu1 %v4323_v0 }
 0x13d   : > { %903 = vmatmul.mubr.bf16.gmra.mrb[44].mxu0 %v3905_v9  ;;  %1096 = vmatmul.mubr.bf16.gmra.mrb[44].mxu1 %v3905_v9 }
 0x13e   : > { %912 = vmatprep.mubr.bf16.mxu0 %v4323_v0  ;;  %1105 = vmatprep.mubr.bf16.mxu1 %v4323_v0 }
 0x145   : > { %913 = vmatmul.mubr.bf16.gmra.mrb[48].mxu0 %v3906_v14  ;;  %1106 = vmatmul.mubr.bf16.gmra.mrb[48].mxu1 %v3906_v14 }
 0x146   : > { %922 = vmatprep.mubr.bf16.mxu0 %v4323_v0  ;;  %1115 = vmatprep.mubr.bf16.mxu1 %v4323_v0 }
 0x14d   : > { %923 = vmatmul.mubr.bf16.gmra.mrb[52].mxu0 %v3909_v15  ;;  %1116 = vmatmul.mubr.bf16.gmra.mrb[52].mxu1 %v3909_v15 }
 0x14e   : > { %932 = vmatprep.mubr.bf16.mxu0 %v4323_v0  ;;  %1125 = vmatprep.mubr.bf16.mxu1 %v4323_v0 }
 0x155   : > { %933 = vmatmul.mubr.bf16.gmra.mrb[56].mxu0 %v3912_v16  ;;  %1126 = vmatmul.mubr.bf16.gmra.mrb[56].mxu1 %v3912_v16 }
 0x156   : > { %942 = vmatprep.mubr.bf16.mxu0 %v4323_v0  ;;  %1135 = vmatprep.mubr.bf16.mxu1 %v4323_v0 }
 0x15d   : > { %943 = vmatmul.mubr.bf16.gmra.mrb[60].mxu0 %v3915_v17  ;;  %1136 = vmatmul.mubr.bf16.gmra.mrb[60].mxu1 %v3915_v17 }
 0x1b8   : > { %v794_v0 = vpop.f32.mrb[0].mxu0  ;;  %v987_v29 = vpop.f32.mrb[0].mxu1 }
 0x1b9   : > { %v795_v30 = vadd.f32 %v794_v0, %v4840_v25  ;;  %v988_v31 = vadd.f32 %v987_v29, %v4842_v26  ;;  %v796_v32 = vpop.f32.mrb[1].mxu0  ;;  %v989_v33 = vpop.f32.mrb[1].mxu1 }
 0x1ba   : > { %v797_v34 = vadd.f32 %v796_v32, %v4844_v27  ;;  %v990_v35 = vadd.f32 %v989_v33, %v4846_v28  ;;  %v798_v36 = vpop.f32.mrb[2].mxu0  ;;  %v991_v37 = vpop.f32.mrb[2].mxu1 }
 0x1bb   : > { %v1146_v38 = vmax.f32 %v795_v30, 0.0  ;;  %v1148_v39 = vmax.f32 %v988_v31, 0.0  ;;  %v799_v40 = vadd.f32 %v798_v36, %v4840_v25  ;;  %v992_v41 = vadd.f32 %v991_v37, %v4842_v26  ;;  %v800_v42 = vpop.f32.mrb[3].mxu0  ;;  %v993_v43 = vpop.f32.mrb[3].mxu1 }
 0x1bc   : > { %v1147_v44 = vmax.f32 %v797_v34, 0.0  ;;  %v1149_v45 = vmax.f32 %v990_v35, 0.0  ;;  %v801_v46 = vadd.f32 %v800_v42, %v4844_v27  ;;  %v994_v47 = vadd.f32 %v993_v43, %v4846_v28 }
 0x1bd   : > { %v1150_v48 = vmax.f32 %v799_v40, 0.0  ;;  %v1152_v49 = vmax.f32 %v992_v41, 0.0 }
 0x1be   : > { %v3399_v50 = vpack.c.bf16 %v1147_v44, %v1146_v38  ;;  %v3400_v51 = vpack.c.bf16 %v1149_v45, %v1148_v39  ;;  %v1151_v52 = vmax.f32 %v801_v46, 0.0  ;;  %v1153_v53 = vmax.f32 %v994_v47, 0.0 }
 0x1bf   : > { %v3942_v3 = vpack.c.bf16 %v1150_v48, %v1146_v38  ;;  %v3944_v17 = vpack.c.bf16 %v1152_v49, %v1148_v39 }
 0x1c0   : > { %1658 = vst [vmem:[%s4859_s14] sm:$0xff] %v3399_v50  ;;  %1659 = vst [vmem:[%s4859_s14 + $0x8] sm:$0xff] %v3400_v51  ;;  %v3401_v54 = vpack.c.bf16 %v1151_v52, %v1150_v48  ;;  %v3402_v55 = vpack.c.bf16 %v1153_v53, %v1152_v49  ;;  %v804_v56 = vpop.f32.mrb[4].mxu0  ;;  %v997_v57 = vpop.f32.mrb[4].mxu1  ;;  %v3943_v4 = vpack.c.bf16 %v1151_v52, %v1147_v44 }
 0x1c1   : > { %v4864_v58 = vadd.f32 %v804_v56, %v4840_v25  ;;  %v4867_v59 = vadd.f32 %v997_v57, %v4842_v26  ;;  %v806_v60 = vpop.f32.mrb[5].mxu0  ;;  %v999_v61 = vpop.f32.mrb[5].mxu1  ;;  %v3945_v18 = vpack.c.bf16 %v1153_v53, %v1149_v45 }
 0x1c2   : > { %1660 = vst [vmem:[%s4859_s14 + $0x10] sm:$0xff] %v3401_v54  ;;  %1661 = vst [vmem:[%s4859_s14 + $0x18] sm:$0xff] %v3402_v55  ;;  %v807_v62 = vadd.f32 %v806_v60, %v4844_v27  ;;  %v1000_v63 = vadd.f32 %v999_v61, %v4846_v28  ;;  %v808_v1 = vpop.f32.mrb[6].mxu0  ;;  %v1001_v2 = vpop.f32.mrb[6].mxu1  ;;  %2394 = vmatprep.mubr.bf16.mxu0 %v3943_v4 }
 0x1c3   : > { %v1154_v5 = vmax.f32 %v4864_v58, 0.0  ;;  %v1156_v6 = vmax.f32 %v4867_v59, 0.0  ;;  %v809_v7 = vadd.f32 %v808_v1, %v4840_v25  ;;  %v1002_v8 = vadd.f32 %v1001_v2, %v4842_v26  ;;  %v810_v9 = vpop.f32.mrb[7].mxu0  ;;  %v1003_v10 = vpop.f32.mrb[7].mxu1  ;;  %2395 = vmatmul.mubr.bf16.vlgmr.msra.gmra.mrb[64].mxu0 %v3942_v3  ;;  %2555 = vmatprep.mubr.bf16.mxu1 %v3945_v18 }
 0x1c4   : > { %v1155_v11 = vmax.f32 %v807_v62, 0.0  ;;  %v1157_v12 = vmax.f32 %v1000_v63, 0.0  ;;  %v811_v13 = vadd.f32 %v810_v9, %v4844_v27  ;;  %v1004_v14 = vadd.f32 %v1003_v10, %v4846_v28  ;;  %2556 = vmatmul.mubr.bf16.vlgmr.msra.gmra.mrb[64].mxu1 %v3944_v17 }
 0x1c5   : > { %v1158_v15 = vmax.f32 %v809_v7, 0.0  ;;  %v1160_v16 = vmax.f32 %v1002_v8, 0.0 }
 0x1c6   : > { %v3403_v19 = vpack.c.bf16 %v1155_v11, %v1154_v5  ;;  %v3404_v20 = vpack.c.bf16 %v1157_v12, %v1156_v6  ;;  %v1159_v21 = vmax.f32 %v811_v13, 0.0  ;;  %v1161_v22 = vmax.f32 %v1004_v14, 0.0 }
 0x1c7   : > { %v3948_v52 = vpack.c.bf16 %v1158_v15, %v1154_v5  ;;  %v3949_v53 = vpack.c.bf16 %v1160_v16, %v1156_v6 }
 0x1c8   : > { %1662 = vst [vmem:[%s4859_s14 + $0x20] sm:$0xff] %v3403_v19  ;;  %1663 = vst [vmem:[%s4859_s14 + $0x28] sm:$0xff] %v3404_v20  ;;  %v3405_v23 = vpack.c.bf16 %v1159_v21, %v1158_v15  ;;  %v3406_v24 = vpack.c.bf16 %v1161_v22, %v1160_v16  ;;  %v814_v0 = vpop.f32.mrb[8].mxu0  ;;  %v1007_v29 = vpop.f32.mrb[8].mxu1  ;;  %v3946_v38 = vpack.c.bf16 %v1159_v21, %v1155_v11 }
 0x1c9   : > { %v4882_v30 = vadd.f32 %v814_v0, %v4840_v25  ;;  %v4885_v31 = vadd.f32 %v1007_v29, %v4842_v26  ;;  %v816_v32 = vpop.f32.mrb[9].mxu0  ;;  %v1009_v33 = vpop.f32.mrb[9].mxu1  ;;  %v3947_v39 = vpack.c.bf16 %v1161_v22, %v1157_v12 }
 0x1ca   : > { %1664 = vst [vmem:[%s4859_s14 + $0x30] sm:$0xff] %v3405_v23  ;;  %1665 = vst [vmem:[%s4859_s14 + $0x38] sm:$0xff] %v3406_v24  ;;  %v817_v34 = vadd.f32 %v816_v32, %v4844_v27  ;;  %v1010_v35 = vadd.f32 %v1009_v33, %v4846_v28  ;;  %v818_v36 = vpop.f32.mrb[10].mxu0  ;;  %v1011_v37 = vpop.f32.mrb[10].mxu1  ;;  %2402 = vmatprep.mubr.bf16.mxu0 %v3946_v38 }
 0x1cb   : > { %v1162_v40 = vmax.f32 %v4882_v30, 0.0  ;;  %v1164_v41 = vmax.f32 %v4885_v31, 0.0  ;;  %v819_v42 = vadd.f32 %v818_v36, %v4840_v25  ;;  %v1012_v43 = vadd.f32 %v1011_v37, %v4842_v26  ;;  %v820_v44 = vpop.f32.mrb[11].mxu0  ;;  %v1013_v45 = vpop.f32.mrb[11].mxu1  ;;  %2563 = vmatprep.mubr.bf16.mxu1 %v3947_v39  ;;  %2403 = vmatmul.mubr.bf16.gmra.mrb[68].mxu0 %v3948_v52 }
 0x1cc   : > { %v1163_v46 = vmax.f32 %v817_v34, 0.0  ;;  %v1165_v47 = vmax.f32 %v1010_v35, 0.0  ;;  %v821_v48 = vadd.f32 %v820_v44, %v4844_v27  ;;  %v1014_v49 = vadd.f32 %v1013_v45, %v4846_v28  ;;  %2564 = vmatmul.mubr.bf16.gmra.mrb[68].mxu1 %v3949_v53 }
 0x1cd   : > { %v1166_v50 = vmax.f32 %v819_v42, 0.0  ;;  %v1168_v51 = vmax.f32 %v1012_v43, 0.0 }
 0x1ce   : > { %v3407_v54 = vpack.c.bf16 %v1163_v46, %v1162_v40  ;;  %v3408_v55 = vpack.c.bf16 %v1165_v47, %v1164_v41  ;;  %v1167_v56 = vmax.f32 %v821_v48, 0.0  ;;  %v1169_v57 = vmax.f32 %v1014_v49, 0.0 }
 0x1cf   : > { %v3952_v21 = vpack.c.bf16 %v1166_v50, %v1162_v40  ;;  %v3953_v22 = vpack.c.bf16 %v1168_v51, %v1164_v41 }
 0x1d0   : > { %1666 = vst [vmem:[%s4859_s14 + $0x40] sm:$0xff] %v3407_v54  ;;  %1667 = vst [vmem:[%s4859_s14 + $0x48] sm:$0xff] %v3408_v55  ;;  %v3409_v58 = vpack.c.bf16 %v1167_v56, %v1166_v50  ;;  %v3410_v59 = vpack.c.bf16 %v1169_v57, %v1168_v51  ;;  %v824_v60 = vpop.f32.mrb[12].mxu0  ;;  %v1017_v61 = vpop.f32.mrb[12].mxu1  ;;  %v3950_v7 = vpack.c.bf16 %v1167_v56, %v1163_v46 }
 0x1d1   : > { %v4900_v62 = vadd.f32 %v824_v60, %v4840_v25  ;;  %v4903_v63 = vadd.f32 %v1017_v61, %v4842_v26  ;;  %v826_v1 = vpop.f32.mrb[13].mxu0  ;;  %v1019_v2 = vpop.f32.mrb[13].mxu1  ;;  %v3951_v8 = vpack.c.bf16 %v1169_v57, %v1165_v47 }
 0x1d2   : > { %1668 = vst [vmem:[%s4859_s14 + $0x50] sm:$0xff] %v3409_v58  ;;  %1669 = vst [vmem:[%s4859_s14 + $0x58] sm:$0xff] %v3410_v59  ;;  %v827_v3 = vadd.f32 %v826_v1, %v4844_v27  ;;  %v1020_v4 = vadd.f32 %v1019_v2, %v4846_v28  ;;  %v828_v5 = vpop.f32.mrb[14].mxu0  ;;  %v1021_v6 = vpop.f32.mrb[14].mxu1  ;;  %2410 = vmatprep.mubr.bf16.mxu0 %v3950_v7 }
 0x1d3   : > { %v1170_v9 = vmax.f32 %v4900_v62, 0.0  ;;  %v1172_v10 = vmax.f32 %v4903_v63, 0.0  ;;  %v829_v11 = vadd.f32 %v828_v5, %v4840_v25  ;;  %v1022_v12 = vadd.f32 %v1021_v6, %v4842_v26  ;;  %v830_v13 = vpop.f32.mrb[15].mxu0  ;;  %v1023_v14 = vpop.f32.mrb[15].mxu1  ;;  %2571 = vmatprep.mubr.bf16.mxu1 %v3951_v8  ;;  %2411 = vmatmul.mubr.bf16.gmra.mrb[72].mxu0 %v3952_v21 }
 0x1d4   : > { %v1171_v15 = vmax.f32 %v827_v3, 0.0  ;;  %v1173_v16 = vmax.f32 %v1020_v4, 0.0  ;;  %v831_v17 = vadd.f32 %v830_v13, %v4844_v27  ;;  %v1024_v18 = vadd.f32 %v1023_v14, %v4846_v28  ;;  %2572 = vmatmul.mubr.bf16.gmra.mrb[72].mxu1 %v3953_v22 }
 0x1d5   : > { %v1174_v19 = vmax.f32 %v829_v11, 0.0  ;;  %v1176_v20 = vmax.f32 %v1022_v12, 0.0 }
 0x1d6   : > { %v3411_v23 = vpack.c.bf16 %v1171_v15, %v1170_v9  ;;  %v3412_v24 = vpack.c.bf16 %v1173_v16, %v1172_v10  ;;  %v1175_v0 = vmax.f32 %v831_v17, 0.0  ;;  %v1177_v29 = vmax.f32 %v1024_v18, 0.0 }
 0x1d7   : > { %v3956_v56 = vpack.c.bf16 %v1174_v19, %v1170_v9  ;;  %v3957_v57 = vpack.c.bf16 %v1176_v20, %v1172_v10 }
 0x1d8   : > { %1670 = vst [vmem:[%s4859_s14 + $0x60] sm:$0xff] %v3411_v23  ;;  %1671 = vst [vmem:[%s4859_s14 + $0x68] sm:$0xff] %v3412_v24  ;;  %v3413_v30 = vpack.c.bf16 %v1175_v0, %v1174_v19  ;;  %v3414_v31 = vpack.c.bf16 %v1177_v29, %v1176_v20  ;;  %v834_v32 = vpop.f32.mrb[16].mxu0  ;;  %v1027_v33 = vpop.f32.mrb[16].mxu1  ;;  %v3954_v42 = vpack.c.bf16 %v1175_v0, %v1171_v15 }
 0x1d9   : > { %v4918_v34 = vadd.f32 %v834_v32, %v4840_v25  ;;  %v4921_v35 = vadd.f32 %v1027_v33, %v4842_v26  ;;  %v836_v36 = vpop.f32.mrb[17].mxu0  ;;  %v1029_v37 = vpop.f32.mrb[17].mxu1  ;;  %v3955_v43 = vpack.c.bf16 %v1177_v29, %v1173_v16 }
 0x1da   : > { %1672 = vst [vmem:[%s4859_s14 + $0x70] sm:$0xff] %v3413_v30  ;;  %1673 = vst [vmem:[%s4859_s14 + $0x78] sm:$0xff] %v3414_v31  ;;  %v837_v38 = vadd.f32 %v836_v36, %v4844_v27  ;;  %v1030_v39 = vadd.f32 %v1029_v37, %v4846_v28  ;;  %v838_v40 = vpop.f32.mrb[18].mxu0  ;;  %v1031_v41 = vpop.f32.mrb[18].mxu1  ;;  %2418 = vmatprep.mubr.bf16.mxu0 %v3954_v42 }
 0x1db   : > { %v1178_v44 = vmax.f32 %v4918_v34, 0.0  ;;  %v1180_v45 = vmax.f32 %v4921_v35, 0.0  ;;  %v839_v46 = vadd.f32 %v838_v40, %v4840_v25  ;;  %v1032_v47 = vadd.f32 %v1031_v41, %v4842_v26  ;;  %v840_v48 = vpop.f32.mrb[19].mxu0  ;;  %v1033_v49 = vpop.f32.mrb[19].mxu1  ;;  %2579 = vmatprep.mubr.bf16.mxu1 %v3955_v43  ;;  %2419 = vmatmul.mubr.bf16.gmra.mrb[76].mxu0 %v3956_v56 }
 0x1dc   : > { %v1179_v50 = vmax.f32 %v837_v38, 0.0  ;;  %v1181_v51 = vmax.f32 %v1030_v39, 0.0  ;;  %v841_v52 = vadd.f32 %v840_v48, %v4844_v27  ;;  %v1034_v53 = vadd.f32 %v1033_v49, %v4846_v28  ;;  %2580 = vmatmul.mubr.bf16.gmra.mrb[76].mxu1 %v3957_v57 }
 0x1dd   : > { %v1182_v54 = vmax.f32 %v839_v46, 0.0  ;;  %v1184_v55 = vmax.f32 %v1032_v47, 0.0 }
 0x1de   : > { %v3415_v58 = vpack.c.bf16 %v1179_v50, %v1178_v44  ;;  %v3416_v59 = vpack.c.bf16 %v1181_v51, %v1180_v45  ;;  %v1183_v60 = vmax.f32 %v841_v52, 0.0  ;;  %v1185_v61 = vmax.f32 %v1034_v53, 0.0 }
 0x1df   : > { %v3960_v0 = vpack.c.bf16 %v1182_v54, %v1178_v44  ;;  %v3961_v29 = vpack.c.bf16 %v1184_v55, %v1180_v45 }
 0x1e0   : > { %1674 = vst [vmem:[%s4859_s14 + $0x80] sm:$0xff] %v3415_v58  ;;  %1675 = vst [vmem:[%s4859_s14 + $0x88] sm:$0xff] %v3416_v59  ;;  %v3417_v62 = vpack.c.bf16 %v1183_v60, %v1182_v54  ;;  %v3418_v63 = vpack.c.bf16 %v1185_v61, %v1184_v55  ;;  %v844_v1 = vpop.f32.mrb[20].mxu0  ;;  %v1037_v2 = vpop.f32.mrb[20].mxu1  ;;  %v3958_v11 = vpack.c.bf16 %v1183_v60, %v1179_v50 }
 0x1e1   : > { %v4936_v3 = vadd.f32 %v844_v1, %v4840_v25  ;;  %v4939_v4 = vadd.f32 %v1037_v2, %v4842_v26  ;;  %v846_v5 = vpop.f32.mrb[21].mxu0  ;;  %v1039_v6 = vpop.f32.mrb[21].mxu1  ;;  %v3959_v12 = vpack.c.bf16 %v1185_v61, %v1181_v51 }
 0x1e2   : > { %1676 = vst [vmem:[%s4859_s14 + $0x90] sm:$0xff] %v3417_v62  ;;  %1677 = vst [vmem:[%s4859_s14 + $0x98] sm:$0xff] %v3418_v63  ;;  %v847_v7 = vadd.f32 %v846_v5, %v4844_v27  ;;  %v1040_v8 = vadd.f32 %v1039_v6, %v4846_v28  ;;  %v848_v9 = vpop.f32.mrb[22].mxu0  ;;  %v1041_v10 = vpop.f32.mrb[22].mxu1  ;;  %2426 = vmatprep.mubr.bf16.mxu0 %v3958_v11 }
 0x1e3   : > { %v1186_v13 = vmax.f32 %v4936_v3, 0.0  ;;  %v1188_v14 = vmax.f32 %v4939_v4, 0.0  ;;  %v849_v15 = vadd.f32 %v848_v9, %v4840_v25  ;;  %v1042_v16 = vadd.f32 %v1041_v10, %v4842_v26  ;;  %v850_v17 = vpop.f32.mrb[23].mxu0  ;;  %v1043_v18 = vpop.f32.mrb[23].mxu1  ;;  %2587 = vmatprep.mubr.bf16.mxu1 %v3959_v12  ;;  %2427 = vmatmul.mubr.bf16.gmra.mrb[80].mxu0 %v3960_v0 }
 0x1e4   : > { %v1187_v19 = vmax.f32 %v847_v7, 0.0  ;;  %v1189_v20 = vmax.f32 %v1040_v8, 0.0  ;;  %v851_v21 = vadd.f32 %v850_v17, %v4844_v27  ;;  %v1044_v22 = vadd.f32 %v1043_v18, %v4846_v28  ;;  %2588 = vmatmul.mubr.bf16.gmra.mrb[80].mxu1 %v3961_v29 }
 0x1e5   : > { %v1190_v23 = vmax.f32 %v849_v15, 0.0  ;;  %v1192_v24 = vmax.f32 %v1042_v16, 0.0 }
 0x1e6   : > { %v3419_v30 = vpack.c.bf16 %v1187_v19, %v1186_v13  ;;  %v3420_v31 = vpack.c.bf16 %v1189_v20, %v1188_v14  ;;  %v1191_v32 = vmax.f32 %v851_v21, 0.0  ;;  %v1193_v33 = vmax.f32 %v1044_v22, 0.0 }
 0x1e7   : > { %v3964_v60 = vpack.c.bf16 %v1190_v23, %v1186_v13  ;;  %v3965_v61 = vpack.c.bf16 %v1192_v24, %v1188_v14 }
 0x1e8   : > { %1678 = vst [vmem:[%s4859_s14 + $0xa0] sm:$0xff] %v3419_v30  ;;  %1679 = vst [vmem:[%s4859_s14 + $0xa8] sm:$0xff] %v3420_v31  ;;  %v3421_v34 = vpack.c.bf16 %v1191_v32, %v1190_v23  ;;  %v3422_v35 = vpack.c.bf16 %v1193_v33, %v1192_v24  ;;  %v854_v36 = vpop.f32.mrb[24].mxu0  ;;  %v1047_v37 = vpop.f32.mrb[24].mxu1  ;;  %v3962_v46 = vpack.c.bf16 %v1191_v32, %v1187_v19 }
 0x1e9   : > { %v4954_v38 = vadd.f32 %v854_v36, %v4840_v25  ;;  %v4957_v39 = vadd.f32 %v1047_v37, %v4842_v26  ;;  %v856_v40 = vpop.f32.mrb[25].mxu0  ;;  %v1049_v41 = vpop.f32.mrb[25].mxu1  ;;  %v3963_v47 = vpack.c.bf16 %v1193_v33, %v1189_v20 }
 0x1ea   : > { %1680 = vst [vmem:[%s4859_s14 + $0xb0] sm:$0xff] %v3421_v34  ;;  %1681 = vst [vmem:[%s4859_s14 + $0xb8] sm:$0xff] %v3422_v35  ;;  %v857_v42 = vadd.f32 %v856_v40, %v4844_v27  ;;  %v1050_v43 = vadd.f32 %v1049_v41, %v4846_v28  ;;  %v858_v44 = vpop.f32.mrb[26].mxu0  ;;  %v1051_v45 = vpop.f32.mrb[26].mxu1  ;;  %2434 = vmatprep.mubr.bf16.mxu0 %v3962_v46 }
 0x1eb   : > { %v1194_v48 = vmax.f32 %v4954_v38, 0.0  ;;  %v1196_v49 = vmax.f32 %v4957_v39, 0.0  ;;  %v859_v50 = vadd.f32 %v858_v44, %v4840_v25  ;;  %v1052_v51 = vadd.f32 %v1051_v45, %v4842_v26  ;;  %v860_v52 = vpop.f32.mrb[27].mxu0  ;;  %v1053_v53 = vpop.f32.mrb[27].mxu1  ;;  %2595 = vmatprep.mubr.bf16.mxu1 %v3963_v47  ;;  %2435 = vmatmul.mubr.bf16.gmra.mrb[84].mxu0 %v3964_v60 }
 0x1ec   : > { %v1195_v54 = vmax.f32 %v857_v42, 0.0  ;;  %v1197_v55 = vmax.f32 %v1050_v43, 0.0  ;;  %v861_v56 = vadd.f32 %v860_v52, %v4844_v27  ;;  %v1054_v57 = vadd.f32 %v1053_v53, %v4846_v28  ;;  %2596 = vmatmul.mubr.bf16.gmra.mrb[84].mxu1 %v3965_v61 }
 0x1ed   : > { %v1198_v58 = vmax.f32 %v859_v50, 0.0  ;;  %v1200_v59 = vmax.f32 %v1052_v51, 0.0 }
 0x1ee   : > { %v3423_v62 = vpack.c.bf16 %v1195_v54, %v1194_v48  ;;  %v3424_v63 = vpack.c.bf16 %v1197_v55, %v1196_v49  ;;  %v1199_v1 = vmax.f32 %v861_v56, 0.0  ;;  %v1201_v2 = vmax.f32 %v1054_v57, 0.0 }
 0x1ef   : > { %v3968_v32 = vpack.c.bf16 %v1198_v58, %v1194_v48  ;;  %v3969_v33 = vpack.c.bf16 %v1200_v59, %v1196_v49 }
 0x1f0   : > { %1682 = vst [vmem:[%s4859_s14 + $0xc0] sm:$0xff] %v3423_v62  ;;  %1683 = vst [vmem:[%s4859_s14 + $0xc8] sm:$0xff] %v3424_v63  ;;  %v3425_v3 = vpack.c.bf16 %v1199_v1, %v1198_v58  ;;  %v3426_v4 = vpack.c.bf16 %v1201_v2, %v1200_v59  ;;  %v864_v5 = vpop.f32.mrb[28].mxu0  ;;  %v1057_v6 = vpop.f32.mrb[28].mxu1  ;;  %v3966_v15 = vpack.c.bf16 %v1199_v1, %v1195_v54 }
 0x1f1   : > { %v4972_v7 = vadd.f32 %v864_v5, %v4840_v25  ;;  %v4975_v8 = vadd.f32 %v1057_v6, %v4842_v26  ;;  %v866_v9 = vpop.f32.mrb[29].mxu0  ;;  %v1059_v10 = vpop.f32.mrb[29].mxu1  ;;  %v3967_v16 = vpack.c.bf16 %v1201_v2, %v1197_v55 }
 0x1f2   : > { %1684 = vst [vmem:[%s4859_s14 + $0xd0] sm:$0xff] %v3425_v3  ;;  %1685 = vst [vmem:[%s4859_s14 + $0xd8] sm:$0xff] %v3426_v4  ;;  %v867_v11 = vadd.f32 %v866_v9, %v4844_v27  ;;  %v1060_v12 = vadd.f32 %v1059_v10, %v4846_v28  ;;  %v868_v13 = vpop.f32.mrb[30].mxu0  ;;  %v1061_v14 = vpop.f32.mrb[30].mxu1  ;;  %2442 = vmatprep.mubr.bf16.mxu0 %v3966_v15 }
 0x1f3   : > { %v1202_v17 = vmax.f32 %v4972_v7, 0.0  ;;  %v1204_v18 = vmax.f32 %v4975_v8, 0.0  ;;  %v869_v19 = vadd.f32 %v868_v13, %v4840_v25  ;;  %v1062_v20 = vadd.f32 %v1061_v14, %v4842_v26  ;;  %v870_v21 = vpop.f32.mrb[31].mxu0  ;;  %v1063_v22 = vpop.f32.mrb[31].mxu1  ;;  %2603 = vmatprep.mubr.bf16.mxu1 %v3967_v16  ;;  %2443 = vmatmul.mubr.bf16.gmra.mrb[88].mxu0 %v3968_v32 }
 0x1f4   : > { %v1203_v23 = vmax.f32 %v867_v11, 0.0  ;;  %v1205_v24 = vmax.f32 %v1060_v12, 0.0  ;;  %v871_v0 = vadd.f32 %v870_v21, %v4844_v27  ;;  %v1064_v29 = vadd.f32 %v1063_v22, %v4846_v28  ;;  %2604 = vmatmul.mubr.bf16.gmra.mrb[88].mxu1 %v3969_v33 }
 0x1f5   : > { %v1206_v30 = vmax.f32 %v869_v19, 0.0  ;;  %v1208_v31 = vmax.f32 %v1062_v20, 0.0 }
 0x1f6   : > { %v3427_v34 = vpack.c.bf16 %v1203_v23, %v1202_v17  ;;  %v3428_v35 = vpack.c.bf16 %v1205_v24, %v1204_v18  ;;  %v1207_v36 = vmax.f32 %v871_v0, 0.0  ;;  %v1209_v37 = vmax.f32 %v1064_v29, 0.0 }
 0x1f7   : > { %v3972_v1 = vpack.c.bf16 %v1206_v30, %v1202_v17  ;;  %v3973_v2 = vpack.c.bf16 %v1208_v31, %v1204_v18 }
 0x1f8   : > { %1686 = vst [vmem:[%s4859_s14 + $0xe0] sm:$0xff] %v3427_v34  ;;  %1687 = vst [vmem:[%s4859_s14 + $0xe8] sm:$0xff] %v3428_v35  ;;  %v3429_v38 = vpack.c.bf16 %v1207_v36, %v1206_v30  ;;  %v3430_v39 = vpack.c.bf16 %v1209_v37, %v1208_v31  ;;  %v874_v40 = vpop.f32.mrb[32].mxu0  ;;  %v1067_v41 = vpop.f32.mrb[32].mxu1  ;;  %v3970_v50 = vpack.c.bf16 %v1207_v36, %v1203_v23 }
 0x1f9   : > { %v4990_v42 = vadd.f32 %v874_v40, %v4840_v25  ;;  %v4993_v43 = vadd.f32 %v1067_v41, %v4842_v26  ;;  %v876_v44 = vpop.f32.mrb[33].mxu0  ;;  %v1069_v45 = vpop.f32.mrb[33].mxu1  ;;  %v3971_v51 = vpack.c.bf16 %v1209_v37, %v1205_v24 }
 0x1fa   : > { %1688 = vst [vmem:[%s4859_s14 + $0xf0] sm:$0xff] %v3429_v38  ;;  %1689 = vst [vmem:[%s4859_s14 + $0xf8] sm:$0xff] %v3430_v39  ;;  %v877_v46 = vadd.f32 %v876_v44, %v4844_v27  ;;  %v1070_v47 = vadd.f32 %v1069_v45, %v4846_v28  ;;  %v878_v48 = vpop.f32.mrb[34].mxu0  ;;  %v1071_v49 = vpop.f32.mrb[34].mxu1  ;;  %2450 = vmatprep.mubr.bf16.mxu0 %v3970_v50 }
 0x1fb   : > { %v1210_v52 = vmax.f32 %v4990_v42, 0.0  ;;  %v1212_v53 = vmax.f32 %v4993_v43, 0.0  ;;  %v879_v54 = vadd.f32 %v878_v48, %v4840_v25  ;;  %v1072_v55 = vadd.f32 %v1071_v49, %v4842_v26  ;;  %v880_v56 = vpop.f32.mrb[35].mxu0  ;;  %v1073_v57 = vpop.f32.mrb[35].mxu1  ;;  %2611 = vmatprep.mubr.bf16.mxu1 %v3971_v51  ;;  %2451 = vmatmul.mubr.bf16.gmra.mrb[92].mxu0 %v3972_v1 }
 0x1fc   : > { %v1211_v58 = vmax.f32 %v877_v46, 0.0  ;;  %v1213_v59 = vmax.f32 %v1070_v47, 0.0  ;;  %v881_v60 = vadd.f32 %v880_v56, %v4844_v27  ;;  %v1074_v61 = vadd.f32 %v1073_v57, %v4846_v28  ;;  %2612 = vmatmul.mubr.bf16.gmra.mrb[92].mxu1 %v3973_v2 }
 0x1fd   : > { %v1214_v62 = vmax.f32 %v879_v54, 0.0  ;;  %v1216_v63 = vmax.f32 %v1072_v55, 0.0 }
 0x1fe   : > { %v3431_v3 = vpack.c.bf16 %v1211_v58, %v1210_v52  ;;  %v3432_v4 = vpack.c.bf16 %v1213_v59, %v1212_v53  ;;  %v1215_v5 = vmax.f32 %v881_v60, 0.0  ;;  %v1217_v6 = vmax.f32 %v1074_v61, 0.0 }
 0x1ff   : > { %v3976_v36 = vpack.c.bf16 %v1214_v62, %v1210_v52  ;;  %v3977_v37 = vpack.c.bf16 %v1216_v63, %v1212_v53 }
 0x200   : > { %1690 = vst [vmem:[%s4859_s14 + $0x100] sm:$0xff] %v3431_v3  ;;  %1691 = vst [vmem:[%s4859_s14 + $0x108] sm:$0xff] %v3432_v4  ;;  %v3433_v7 = vpack.c.bf16 %v1215_v5, %v1214_v62  ;;  %v3434_v8 = vpack.c.bf16 %v1217_v6, %v1216_v63  ;;  %v884_v9 = vpop.f32.mrb[36].mxu0  ;;  %v1077_v10 = vpop.f32.mrb[36].mxu1  ;;  %v3974_v19 = vpack.c.bf16 %v1215_v5, %v1211_v58 }
 0x201   : > { %v5008_v11 = vadd.f32 %v884_v9, %v4840_v25  ;;  %v5011_v12 = vadd.f32 %v1077_v10, %v4842_v26  ;;  %v886_v13 = vpop.f32.mrb[37].mxu0  ;;  %v1079_v14 = vpop.f32.mrb[37].mxu1  ;;  %v3975_v20 = vpack.c.bf16 %v1217_v6, %v1213_v59 }
 0x202   : > { %1692 = vst [vmem:[%s4859_s14 + $0x110] sm:$0xff] %v3433_v7  ;;  %1693 = vst [vmem:[%s4859_s14 + $0x118] sm:$0xff] %v3434_v8  ;;  %v887_v15 = vadd.f32 %v886_v13, %v4844_v27  ;;  %v1080_v16 = vadd.f32 %v1079_v14, %v4846_v28  ;;  %v888_v17 = vpop.f32.mrb[38].mxu0  ;;  %v1081_v18 = vpop.f32.mrb[38].mxu1  ;;  %2458 = vmatprep.mubr.bf16.mxu0 %v3974_v19 }
 0x203   : > { %v1218_v21 = vmax.f32 %v5008_v11, 0.0  ;;  %v1220_v22 = vmax.f32 %v5011_v12, 0.0  ;;  %v889_v23 = vadd.f32 %v888_v17, %v4840_v25  ;;  %v1082_v24 = vadd.f32 %v1081_v18, %v4842_v26  ;;  %v890_v0 = vpop.f32.mrb[39].mxu0  ;;  %v1083_v29 = vpop.f32.mrb[39].mxu1  ;;  %2619 = vmatprep.mubr.bf16.mxu1 %v3975_v20  ;;  %2459 = vmatmul.mubr.bf16.gmra.mrb[96].mxu0 %v3976_v36 }
 0x204   : > { %v1219_v30 = vmax.f32 %v887_v15, 0.0  ;;  %v1221_v31 = vmax.f32 %v1080_v16, 0.0  ;;  %v891_v32 = vadd.f32 %v890_v0, %v4844_v27  ;;  %v1084_v33 = vadd.f32 %v1083_v29, %v4846_v28  ;;  %2620 = vmatmul.mubr.bf16.gmra.mrb[96].mxu1 %v3977_v37 }
 0x205   : > { %v1222_v34 = vmax.f32 %v889_v23, 0.0  ;;  %v1224_v35 = vmax.f32 %v1082_v24, 0.0 }
 0x206   : > { %v3435_v38 = vpack.c.bf16 %v1219_v30, %v1218_v21  ;;  %v3436_v39 = vpack.c.bf16 %v1221_v31, %v1220_v22  ;;  %v1223_v40 = vmax.f32 %v891_v32, 0.0  ;;  %v1225_v41 = vmax.f32 %v1084_v33, 0.0 }
 0x207   : > { %v3980_v5 = vpack.c.bf16 %v1222_v34, %v1218_v21  ;;  %v3981_v6 = vpack.c.bf16 %v1224_v35, %v1220_v22 }
 0x208   : > { %1694 = vst [vmem:[%s4859_s14 + $0x120] sm:$0xff] %v3435_v38  ;;  %1695 = vst [vmem:[%s4859_s14 + $0x128] sm:$0xff] %v3436_v39  ;;  %v3437_v42 = vpack.c.bf16 %v1223_v40, %v1222_v34  ;;  %v3438_v43 = vpack.c.bf16 %v1225_v41, %v1224_v35  ;;  %v894_v44 = vpop.f32.mrb[40].mxu0  ;;  %v1087_v45 = vpop.f32.mrb[40].mxu1  ;;  %v3978_v54 = vpack.c.bf16 %v1223_v40, %v1219_v30 }
 0x209   : > { %v5026_v46 = vadd.f32 %v894_v44, %v4840_v25  ;;  %v5029_v47 = vadd.f32 %v1087_v45, %v4842_v26  ;;  %v896_v48 = vpop.f32.mrb[41].mxu0  ;;  %v1089_v49 = vpop.f32.mrb[41].mxu1  ;;  %v3979_v55 = vpack.c.bf16 %v1225_v41, %v1221_v31 }
 0x20a   : > { %1696 = vst [vmem:[%s4859_s14 + $0x130] sm:$0xff] %v3437_v42  ;;  %1697 = vst [vmem:[%s4859_s14 + $0x138] sm:$0xff] %v3438_v43  ;;  %v897_v50 = vadd.f32 %v896_v48, %v4844_v27  ;;  %v1090_v51 = vadd.f32 %v1089_v49, %v4846_v28  ;;  %v898_v52 = vpop.f32.mrb[42].mxu0  ;;  %v1091_v53 = vpop.f32.mrb[42].mxu1  ;;  %2466 = vmatprep.mubr.bf16.mxu0 %v3978_v54 }
 0x20b   : > { %v1226_v56 = vmax.f32 %v5026_v46, 0.0  ;;  %v1228_v57 = vmax.f32 %v5029_v47, 0.0  ;;  %v899_v58 = vadd.f32 %v898_v52, %v4840_v25  ;;  %v1092_v59 = vadd.f32 %v1091_v53, %v4842_v26  ;;  %v900_v60 = vpop.f32.mrb[43].mxu0  ;;  %v1093_v61 = vpop.f32.mrb[43].mxu1  ;;  %2627 = vmatprep.mubr.bf16.mxu1 %v3979_v55  ;;  %2467 = vmatmul.mubr.bf16.gmra.mrb[100].mxu0 %v3980_v5 }
 0x20c   : > { %v1227_v62 = vmax.f32 %v897_v50, 0.0  ;;  %v1229_v63 = vmax.f32 %v1090_v51, 0.0  ;;  %v901_v1 = vadd.f32 %v900_v60, %v4844_v27  ;;  %v1094_v2 = vadd.f32 %v1093_v61, %v4846_v28  ;;  %2628 = vmatmul.mubr.bf16.gmra.mrb[100].mxu1 %v3981_v6 }
 0x20d   : > { %v1230_v3 = vmax.f32 %v899_v58, 0.0  ;;  %v1232_v4 = vmax.f32 %v1092_v59, 0.0 }
 0x20e   : > { %v3439_v7 = vpack.c.bf16 %v1227_v62, %v1226_v56  ;;  %v3440_v8 = vpack.c.bf16 %v1229_v63, %v1228_v57  ;;  %v1231_v9 = vmax.f32 %v901_v1, 0.0  ;;  %v1233_v10 = vmax.f32 %v1094_v2, 0.0 }
 0x20f   : > { %v3984_v40 = vpack.c.bf16 %v1230_v3, %v1226_v56  ;;  %v3985_v41 = vpack.c.bf16 %v1232_v4, %v1228_v57 }
 0x210   : > { %1698 = vst [vmem:[%s4859_s14 + $0x140] sm:$0xff] %v3439_v7  ;;  %1699 = vst [vmem:[%s4859_s14 + $0x148] sm:$0xff] %v3440_v8  ;;  %v3441_v11 = vpack.c.bf16 %v1231_v9, %v1230_v3  ;;  %v3442_v12 = vpack.c.bf16 %v1233_v10, %v1232_v4  ;;  %v904_v13 = vpop.f32.mrb[44].mxu0  ;;  %v1097_v14 = vpop.f32.mrb[44].mxu1  ;;  %v3982_v23 = vpack.c.bf16 %v1231_v9, %v1227_v62 }
 0x211   : > { %v5044_v15 = vadd.f32 %v904_v13, %v4840_v25  ;;  %v5047_v16 = vadd.f32 %v1097_v14, %v4842_v26  ;;  %v906_v17 = vpop.f32.mrb[45].mxu0  ;;  %v1099_v18 = vpop.f32.mrb[45].mxu1  ;;  %v3983_v24 = vpack.c.bf16 %v1233_v10, %v1229_v63 }
 0x212   : > { %1700 = vst [vmem:[%s4859_s14 + $0x150] sm:$0xff] %v3441_v11  ;;  %1701 = vst [vmem:[%s4859_s14 + $0x158] sm:$0xff] %v3442_v12  ;;  %v907_v19 = vadd.f32 %v906_v17, %v4844_v27  ;;  %v1100_v20 = vadd.f32 %v1099_v18, %v4846_v28  ;;  %v908_v21 = vpop.f32.mrb[46].mxu0  ;;  %v1101_v22 = vpop.f32.mrb[46].mxu1  ;;  %2474 = vmatprep.mubr.bf16.mxu0 %v3982_v23 }
 0x213   : > { %v1234_v0 = vmax.f32 %v5044_v15, 0.0  ;;  %v1236_v29 = vmax.f32 %v5047_v16, 0.0  ;;  %v909_v30 = vadd.f32 %v908_v21, %v4840_v25  ;;  %v1102_v31 = vadd.f32 %v1101_v22, %v4842_v26  ;;  %v910_v32 = vpop.f32.mrb[47].mxu0  ;;  %v1103_v33 = vpop.f32.mrb[47].mxu1  ;;  %2635 = vmatprep.mubr.bf16.mxu1 %v3983_v24  ;;  %2475 = vmatmul.mubr.bf16.gmra.mrb[104].mxu0 %v3984_v40 }
 0x214   : > { %v1235_v34 = vmax.f32 %v907_v19, 0.0  ;;  %v1237_v35 = vmax.f32 %v1100_v20, 0.0  ;;  %v911_v36 = vadd.f32 %v910_v32, %v4844_v27  ;;  %v1104_v37 = vadd.f32 %v1103_v33, %v4846_v28  ;;  %2636 = vmatmul.mubr.bf16.gmra.mrb[104].mxu1 %v3985_v41 }
 0x215   : > { %v1238_v38 = vmax.f32 %v909_v30, 0.0  ;;  %v1240_v39 = vmax.f32 %v1102_v31, 0.0 }
 0x216   : > { %v3443_v42 = vpack.c.bf16 %v1235_v34, %v1234_v0  ;;  %v3444_v43 = vpack.c.bf16 %v1237_v35, %v1236_v29  ;;  %v1239_v44 = vmax.f32 %v911_v36, 0.0  ;;  %v1241_v45 = vmax.f32 %v1104_v37, 0.0 }
 0x217   : > { %v3988_v9 = vpack.c.bf16 %v1238_v38, %v1234_v0  ;;  %v3989_v10 = vpack.c.bf16 %v1240_v39, %v1236_v29 }
 0x218   : > { %1702 = vst [vmem:[%s4859_s14 + $0x160] sm:$0xff] %v3443_v42  ;;  %1703 = vst [vmem:[%s4859_s14 + $0x168] sm:$0xff] %v3444_v43  ;;  %v3445_v46 = vpack.c.bf16 %v1239_v44, %v1238_v38  ;;  %v3446_v47 = vpack.c.bf16 %v1241_v45, %v1240_v39  ;;  %v914_v48 = vpop.f32.mrb[48].mxu0  ;;  %v1107_v49 = vpop.f32.mrb[48].mxu1  ;;  %v3986_v58 = vpack.c.bf16 %v1239_v44, %v1235_v34 }
 0x219   : > { %v5062_v50 = vadd.f32 %v914_v48, %v4840_v25  ;;  %v5065_v51 = vadd.f32 %v1107_v49, %v4842_v26  ;;  %v916_v52 = vpop.f32.mrb[49].mxu0  ;;  %v1109_v53 = vpop.f32.mrb[49].mxu1  ;;  %v3987_v59 = vpack.c.bf16 %v1241_v45, %v1237_v35 }
 0x21a   : > { %1704 = vst [vmem:[%s4859_s14 + $0x170] sm:$0xff] %v3445_v46  ;;  %1705 = vst [vmem:[%s4859_s14 + $0x178] sm:$0xff] %v3446_v47  ;;  %v917_v54 = vadd.f32 %v916_v52, %v4844_v27  ;;  %v1110_v55 = vadd.f32 %v1109_v53, %v4846_v28  ;;  %v918_v56 = vpop.f32.mrb[50].mxu0  ;;  %v1111_v57 = vpop.f32.mrb[50].mxu1  ;;  %2482 = vmatprep.mubr.bf16.mxu0 %v3986_v58 }
 0x21b   : > { %v1242_v60 = vmax.f32 %v5062_v50, 0.0  ;;  %v1244_v61 = vmax.f32 %v5065_v51, 0.0  ;;  %v919_v62 = vadd.f32 %v918_v56, %v4840_v25  ;;  %v1112_v63 = vadd.f32 %v1111_v57, %v4842_v26  ;;  %v920_v1 = vpop.f32.mrb[51].mxu0  ;;  %v1113_v2 = vpop.f32.mrb[51].mxu1  ;;  %2643 = vmatprep.mubr.bf16.mxu1 %v3987_v59  ;;  %2483 = vmatmul.mubr.bf16.gmra.mrb[108].mxu0 %v3988_v9 }
 0x21c   : > { %v1243_v3 = vmax.f32 %v917_v54, 0.0  ;;  %v1245_v4 = vmax.f32 %v1110_v55, 0.0  ;;  %v921_v5 = vadd.f32 %v920_v1, %v4844_v27  ;;  %v1114_v6 = vadd.f32 %v1113_v2, %v4846_v28  ;;  %2644 = vmatmul.mubr.bf16.gmra.mrb[108].mxu1 %v3989_v10 }
 0x21d   : > { %v1246_v7 = vmax.f32 %v919_v62, 0.0  ;;  %v1248_v8 = vmax.f32 %v1112_v63, 0.0 }
 0x21e   : > { %v3447_v11 = vpack.c.bf16 %v1243_v3, %v1242_v60  ;;  %v3448_v12 = vpack.c.bf16 %v1245_v4, %v1244_v61  ;;  %v1247_v13 = vmax.f32 %v921_v5, 0.0  ;;  %v1249_v14 = vmax.f32 %v1114_v6, 0.0 }
 0x21f   : > { %v3992_v44 = vpack.c.bf16 %v1246_v7, %v1242_v60  ;;  %v3993_v45 = vpack.c.bf16 %v1248_v8, %v1244_v61 }
 0x220   : > { %1706 = vst [vmem:[%s4859_s14 + $0x180] sm:$0xff] %v3447_v11  ;;  %1707 = vst [vmem:[%s4859_s14 + $0x188] sm:$0xff] %v3448_v12  ;;  %v3449_v15 = vpack.c.bf16 %v1247_v13, %v1246_v7  ;;  %v3450_v16 = vpack.c.bf16 %v1249_v14, %v1248_v8  ;;  %v924_v17 = vpop.f32.mrb[52].mxu0  ;;  %v1117_v18 = vpop.f32.mrb[52].mxu1  ;;  %v3990_v30 = vpack.c.bf16 %v1247_v13, %v1243_v3 }
 0x221   : > { %v5080_v19 = vadd.f32 %v924_v17, %v4840_v25  ;;  %v5083_v20 = vadd.f32 %v1117_v18, %v4842_v26  ;;  %v926_v21 = vpop.f32.mrb[53].mxu0  ;;  %v1119_v22 = vpop.f32.mrb[53].mxu1  ;;  %v3991_v31 = vpack.c.bf16 %v1249_v14, %v1245_v4 }
 0x222   : > { %1708 = vst [vmem:[%s4859_s14 + $0x190] sm:$0xff] %v3449_v15  ;;  %1709 = vst [vmem:[%s4859_s14 + $0x198] sm:$0xff] %v3450_v16  ;;  %v927_v23 = vadd.f32 %v926_v21, %v4844_v27  ;;  %v1120_v24 = vadd.f32 %v1119_v22, %v4846_v28  ;;  %v928_v0 = vpop.f32.mrb[54].mxu0  ;;  %v1121_v29 = vpop.f32.mrb[54].mxu1  ;;  %2490 = vmatprep.mubr.bf16.mxu0 %v3990_v30 }
 0x223   : > { %v1250_v32 = vmax.f32 %v5080_v19, 0.0  ;;  %v1252_v33 = vmax.f32 %v5083_v20, 0.0  ;;  %v929_v34 = vadd.f32 %v928_v0, %v4840_v25  ;;  %v1122_v35 = vadd.f32 %v1121_v29, %v4842_v26  ;;  %v930_v36 = vpop.f32.mrb[55].mxu0  ;;  %v1123_v37 = vpop.f32.mrb[55].mxu1  ;;  %2651 = vmatprep.mubr.bf16.mxu1 %v3991_v31  ;;  %2491 = vmatmul.mubr.bf16.gmra.mrb[112].mxu0 %v3992_v44 }
 0x224   : > { %v1251_v38 = vmax.f32 %v927_v23, 0.0  ;;  %v1253_v39 = vmax.f32 %v1120_v24, 0.0  ;;  %v931_v40 = vadd.f32 %v930_v36, %v4844_v27  ;;  %v1124_v41 = vadd.f32 %v1123_v37, %v4846_v28  ;;  %2652 = vmatmul.mubr.bf16.gmra.mrb[112].mxu1 %v3993_v45 }
 0x225   : > { %v1254_v42 = vmax.f32 %v929_v34, 0.0  ;;  %v1256_v43 = vmax.f32 %v1122_v35, 0.0 }
 0x226   : > { %v3451_v46 = vpack.c.bf16 %v1251_v38, %v1250_v32  ;;  %v3452_v47 = vpack.c.bf16 %v1253_v39, %v1252_v33  ;;  %v1255_v48 = vmax.f32 %v931_v40, 0.0  ;;  %v1257_v49 = vmax.f32 %v1124_v41, 0.0 }
 0x227   : > { %v3996_v13 = vpack.c.bf16 %v1254_v42, %v1250_v32  ;;  %v3997_v14 = vpack.c.bf16 %v1256_v43, %v1252_v33 }
 0x228   : > { %1710 = vst [vmem:[%s4859_s14 + $0x1a0] sm:$0xff] %v3451_v46  ;;  %1711 = vst [vmem:[%s4859_s14 + $0x1a8] sm:$0xff] %v3452_v47  ;;  %v3453_v50 = vpack.c.bf16 %v1255_v48, %v1254_v42  ;;  %v3454_v51 = vpack.c.bf16 %v1257_v49, %v1256_v43  ;;  %v934_v52 = vpop.f32.mrb[56].mxu0  ;;  %v1127_v53 = vpop.f32.mrb[56].mxu1  ;;  %v3994_v62 = vpack.c.bf16 %v1255_v48, %v1251_v38 }
 0x229   : > { %v5098_v54 = vadd.f32 %v934_v52, %v4840_v25  ;;  %v5101_v55 = vadd.f32 %v1127_v53, %v4842_v26  ;;  %v936_v56 = vpop.f32.mrb[57].mxu0  ;;  %v1129_v57 = vpop.f32.mrb[57].mxu1  ;;  %v3995_v63 = vpack.c.bf16 %v1257_v49, %v1253_v39 }
 0x22a   : > { %1712 = vst [vmem:[%s4859_s14 + $0x1b0] sm:$0xff] %v3453_v50  ;;  %1713 = vst [vmem:[%s4859_s14 + $0x1b8] sm:$0xff] %v3454_v51  ;;  %v937_v58 = vadd.f32 %v936_v56, %v4844_v27  ;;  %v1130_v59 = vadd.f32 %v1129_v57, %v4846_v28  ;;  %v938_v60 = vpop.f32.mrb[58].mxu0  ;;  %v1131_v61 = vpop.f32.mrb[58].mxu1  ;;  %2498 = vmatprep.mubr.bf16.mxu0 %v3994_v62 }
 0x22b   : > { %v1258_v1 = vmax.f32 %v5098_v54, 0.0  ;;  %v1260_v2 = vmax.f32 %v5101_v55, 0.0  ;;  %v939_v3 = vadd.f32 %v938_v60, %v4840_v25  ;;  %v1132_v4 = vadd.f32 %v1131_v61, %v4842_v26  ;;  %v940_v5 = vpop.f32.mrb[59].mxu0  ;;  %v1133_v6 = vpop.f32.mrb[59].mxu1  ;;  %2659 = vmatprep.mubr.bf16.mxu1 %v3995_v63  ;;  %2499 = vmatmul.mubr.bf16.gmra.mrb[116].mxu0 %v3996_v13 }
 0x22c   : > { %v1259_v7 = vmax.f32 %v937_v58, 0.0  ;;  %v1261_v8 = vmax.f32 %v1130_v59, 0.0  ;;  %v941_v9 = vadd.f32 %v940_v5, %v4844_v27  ;;  %v1134_v10 = vadd.f32 %v1133_v6, %v4846_v28  ;;  %2660 = vmatmul.mubr.bf16.gmra.mrb[116].mxu1 %v3997_v14 }
 0x22d   : > { %v1262_v11 = vmax.f32 %v939_v3, 0.0  ;;  %v1264_v12 = vmax.f32 %v1132_v4, 0.0 }
 0x22e   : > { %v3455_v15 = vpack.c.bf16 %v1259_v7, %v1258_v1  ;;  %v3456_v16 = vpack.c.bf16 %v1261_v8, %v1260_v2  ;;  %v1263_v17 = vmax.f32 %v941_v9, 0.0  ;;  %v1265_v18 = vmax.f32 %v1134_v10, 0.0 }
 0x22f   : > { %v4000_v48 = vpack.c.bf16 %v1262_v11, %v1258_v1 }
 0x230   : > { %1714 = vst [vmem:[%s4859_s14 + $0x1c0] sm:$0xff] %v3455_v15  ;;  %1715 = vst [vmem:[%s4859_s14 + $0x1c8] sm:$0xff] %v3456_v16  ;;  %v3457_v19 = vpack.c.bf16 %v1263_v17, %v1262_v11  ;;  %v3458_v20 = vpack.c.bf16 %v1265_v18, %v1264_v12  ;;  %v944_v21 = vpop.f32.mrb[60].mxu0  ;;  %v1137_v22 = vpop.f32.mrb[60].mxu1  ;;  %v3998_v34 = vpack.c.bf16 %v1263_v17, %v1259_v7 }
 0x231   : > { %v945_v23 = vadd.f32 %v944_v21, %v4840_v25  ;;  %v1138_v24 = vadd.f32 %v1137_v22, %v4842_v26  ;;  %v946_v0 = vpop.f32.mrb[61].mxu0  ;;  %v1139_v29 = vpop.f32.mrb[61].mxu1  ;;  %v3999_v35 = vpack.c.bf16 %v1265_v18, %v1261_v8 }
 0x232   : > { %1716 = vst [vmem:[%s4859_s14 + $0x1d0] sm:$0xff] %v3457_v19  ;;  %1717 = vst [vmem:[%s4859_s14 + $0x1d8] sm:$0xff] %v3458_v20  ;;  %v947_v30 = vadd.f32 %v946_v0, %v4844_v27  ;;  %v1140_v31 = vadd.f32 %v1139_v29, %v4846_v28  ;;  %v948_v32 = vpop.f32.mrb[62].mxu0  ;;  %v1141_v33 = vpop.f32.mrb[62].mxu1  ;;  %2506 = vmatprep.mubr.bf16.mxu0 %v3998_v34 }
 0x233   : > { %v1266_v36 = vmax.f32 %v945_v23, 0.0  ;;  %v1268_v37 = vmax.f32 %v1138_v24, 0.0  ;;  %v949_v38 = vadd.f32 %v948_v32, %v4840_v25  ;;  %v1142_v39 = vadd.f32 %v1141_v33, %v4842_v26  ;;  %v950_v40 = vpop.f32.mrb[63].mxu0  ;;  %v1143_v41 = vpop.f32.mrb[63].mxu1  ;;  %2667 = vmatprep.mubr.bf16.mxu1 %v3999_v35  ;;  %2507 = vmatmul.mubr.bf16.gmra.mrb[120].mxu0 %v4000_v48 }
 0x234   : > { %v1267_v42 = vmax.f32 %v947_v30, 0.0  ;;  %v1269_v43 = vmax.f32 %v1140_v31, 0.0  ;;  %v951_v44 = vadd.f32 %v950_v40, %v4844_v27  ;;  %v1144_v45 = vadd.f32 %v1143_v41, %v4846_v28 }
 0x235   : > { %v1270_v46 = vmax.f32 %v949_v38, 0.0  ;;  %v1272_v47 = vmax.f32 %v1142_v39, 0.0  ;;  %v4001_v25 = vpack.c.bf16 %v1264_v12, %v1260_v2 }
 0x236   : > { %v3459_v49 = vpack.c.bf16 %v1267_v42, %v1266_v36  ;;  %v3460_v26 = vpack.c.bf16 %v1269_v43, %v1268_v37  ;;  %v1271_v50 = vmax.f32 %v951_v44, 0.0  ;;  %v1273_v51 = vmax.f32 %v1144_v45, 0.0 }
 0x237   : > { %2668 = vmatmul.mubr.bf16.gmra.mrb[120].mxu1 %v4001_v25  ;;  %v4004_v54 = vpack.c.bf16 %v1270_v46, %v1266_v36  ;;  %v4005_v55 = vpack.c.bf16 %v1272_v47, %v1268_v37 }
 0x238   : > { %1718 = vst [vmem:[%s4859_s14 + $0x1e0] sm:$0xff] %v3459_v49  ;;  %1719 = vst [vmem:[%s4859_s14 + $0x1e8] sm:$0xff] %v3460_v26  ;;  %v3461_v52 = vpack.c.bf16 %v1271_v50, %v1270_v46  ;;  %v3462_v53 = vpack.c.bf16 %v1273_v51, %v1272_v47  ;;  %v4002_v27 = vpack.c.bf16 %v1271_v50, %v1267_v42 }
 0x239   : > { %v4003_v28 = vpack.c.bf16 %v1273_v51, %v1269_v43 }
 0x23a   : > { %1720 = vst [vmem:[%s4859_s14 + $0x1f0] sm:$0xff] %v3461_v52  ;;  %1721 = vst [vmem:[%s4859_s14 + $0x1f8] sm:$0xff] %v3462_v53  ;;  %2514 = vmatprep.mubr.bf16.mxu0 %v4002_v27 }
 0x23b   : > { %2675 = vmatprep.mubr.bf16.mxu1 %v4003_v28  ;;  %2515 = vmatmul.mubr.bf16.gmra.mrb[124].mxu0 %v4004_v54 }
 0x23f   : > { %2676 = vmatmul.mubr.bf16.gmra.mrb[124].mxu1 %v4005_v55 }
 0x296   : > { %v3481_v56 = vpop.f32.mrb[64].mxu0 }
 0x297   : > { %v3482_v57 = vpop.f32.mrb[65].mxu0  ;;  %v3593_v60 = vpop.f32.mrb[64].mxu1 }
 0x298   : > { %v3483_v58 = vadd.f32 %v3482_v57, %v3481_v56  ;;  %v3484_v59 = vpop.f32.mrb[66].mxu0  ;;  %v3594_v62 = vpop.f32.mrb[65].mxu1 }
 0x299   : > { %v3485_v61 = vpop.f32.mrb[67].mxu0  ;;  %v3595_v1 = vadd.f32 %v3594_v62, %v3593_v60  ;;  %v3596_v2 = vpop.f32.mrb[66].mxu1 }
 0x29a   : > { %v3486_v63 = vadd.f32 %v3485_v61, %v3484_v59  ;;  %v3597_v3 = vpop.f32.mrb[67].mxu1 }
 0x29b   : > { %v5129_v4 = vadd.f32 %v3595_v1, %v3483_v58  ;;  %v3598_v5 = vadd.f32 %v3597_v3, %v3596_v2 }
 0x29d   : > { %v5131_v6 = vadd.f32 %v3598_v5, %v3486_v63  ;;  %2688 = vst [vmem:[#allocation2] sm:$0xff] (!%p3381_p12), %v5129_v4 }
 0x29e   : > { %v3487_v7 = vpop.f32.mrb[68].mxu0 }
 0x29f   : > { %v3599_v8 = vpop.f32.mrb[68].mxu1  ;;  %v3488_v9 = vpop.f32.mrb[69].mxu0  ;;  %2689 = vst [vmem:[#allocation2 + $0x8] sm:$0xff] (!%p3381_p12), %v5131_v6 }
 0x2a0   : > { %v3489_v10 = vadd.f32 %v3488_v9, %v3487_v7  ;;  %v3600_v11 = vpop.f32.mrb[69].mxu1  ;;  %v3490_v12 = vpop.f32.mrb[70].mxu0 }
 0x2a1   : > { %v3601_v13 = vadd.f32 %v3600_v11, %v3599_v8  ;;  %v3602_v14 = vpop.f32.mrb[70].mxu1  ;;  %v3491_v15 = vpop.f32.mrb[71].mxu0 }
 0x2a2   : > { %v3492_v16 = vadd.f32 %v3491_v15, %v3490_v12  ;;  %v3603_v17 = vpop.f32.mrb[71].mxu1 }
 0x2a3   : > { %v5133_v18 = vadd.f32 %v3601_v13, %v3489_v10  ;;  %v3604_v19 = vadd.f32 %v3603_v17, %v3602_v14 }
 0x2a5   : > { %v5135_v20 = vadd.f32 %v3604_v19, %v3492_v16  ;;  %2690 = vst [vmem:[#allocation2 + $0x10] sm:$0xff] (!%p3381_p12), %v5133_v18 }
 0x2a6   : > { %v3493_v21 = vpop.f32.mrb[72].mxu0 }
 0x2a7   : > { %v3605_v22 = vpop.f32.mrb[72].mxu1  ;;  %v3494_v23 = vpop.f32.mrb[73].mxu0  ;;  %2691 = vst [vmem:[#allocation2 + $0x18] sm:$0xff] (!%p3381_p12), %v5135_v20 }
 0x2a8   : > { %v3495_v24 = vadd.f32 %v3494_v23, %v3493_v21  ;;  %v3606_v0 = vpop.f32.mrb[73].mxu1  ;;  %v3496_v29 = vpop.f32.mrb[74].mxu0 }
 0x2a9   : > { %v3607_v30 = vadd.f32 %v3606_v0, %v3605_v22  ;;  %v3608_v31 = vpop.f32.mrb[74].mxu1  ;;  %v3497_v32 = vpop.f32.mrb[75].mxu0 }
 0x2aa   : > { %v3498_v33 = vadd.f32 %v3497_v32, %v3496_v29  ;;  %v3609_v34 = vpop.f32.mrb[75].mxu1 }
 0x2ab   : > { %v5137_v35 = vadd.f32 %v3607_v30, %v3495_v24  ;;  %v3610_v36 = vadd.f32 %v3609_v34, %v3608_v31 }
 0x2ad   : > { %v5139_v37 = vadd.f32 %v3610_v36, %v3498_v33  ;;  %2692 = vst [vmem:[#allocation2 + $0x20] sm:$0xff] (!%p3381_p12), %v5137_v35 }
 0x2ae   : > { %v3499_v38 = vpop.f32.mrb[76].mxu0 }
 0x2af   : > { %v3611_v39 = vpop.f32.mrb[76].mxu1  ;;  %v3500_v40 = vpop.f32.mrb[77].mxu0  ;;  %2693 = vst [vmem:[#allocation2 + $0x28] sm:$0xff] (!%p3381_p12), %v5139_v37 }
 0x2b0   : > { %v3501_v41 = vadd.f32 %v3500_v40, %v3499_v38  ;;  %v3612_v42 = vpop.f32.mrb[77].mxu1  ;;  %v3502_v43 = vpop.f32.mrb[78].mxu0 }
 0x2b1   : > { %v3613_v44 = vadd.f32 %v3612_v42, %v3611_v39  ;;  %v3614_v45 = vpop.f32.mrb[78].mxu1  ;;  %v3503_v46 = vpop.f32.mrb[79].mxu0 }
 0x2b2   : > { %v3504_v47 = vadd.f32 %v3503_v46, %v3502_v43  ;;  %v3615_v48 = vpop.f32.mrb[79].mxu1 }
 0x2b3   : > { %v5141_v25 = vadd.f32 %v3613_v44, %v3501_v41  ;;  %v3616_v49 = vadd.f32 %v3615_v48, %v3614_v45 }
 0x2b5   : > { %v5143_v26 = vadd.f32 %v3616_v49, %v3504_v47  ;;  %2694 = vst [vmem:[#allocation2 + $0x30] sm:$0xff] (!%p3381_p12), %v5141_v25 }
 0x2b6   : > { %v3505_v50 = vpop.f32.mrb[80].mxu0 }
 0x2b7   : > { %v3617_v51 = vpop.f32.mrb[80].mxu1  ;;  %v3506_v52 = vpop.f32.mrb[81].mxu0  ;;  %2695 = vst [vmem:[#allocation2 + $0x38] sm:$0xff] (!%p3381_p12), %v5143_v26 }
 0x2b8   : > { %v3507_v53 = vadd.f32 %v3506_v52, %v3505_v50  ;;  %v3618_v27 = vpop.f32.mrb[81].mxu1  ;;  %v3508_v28 = vpop.f32.mrb[82].mxu0 }
 0x2b9   : > { %v3619_v54 = vadd.f32 %v3618_v27, %v3617_v51  ;;  %v3620_v55 = vpop.f32.mrb[82].mxu1  ;;  %v3509_v56 = vpop.f32.mrb[83].mxu0 }
 0x2ba   : > { %v3510_v57 = vadd.f32 %v3509_v56, %v3508_v28  ;;  %v3621_v58 = vpop.f32.mrb[83].mxu1 }
 0x2bb   : > { %v5145_v59 = vadd.f32 %v3619_v54, %v3507_v53  ;;  %v3622_v60 = vadd.f32 %v3621_v58, %v3620_v55 }
 0x2bd   : > { %v5147_v61 = vadd.f32 %v3622_v60, %v3510_v57  ;;  %2696 = vst [vmem:[#allocation2 + $0x40] sm:$0xff] (!%p3381_p12), %v5145_v59 }
 0x2be   : > { %v3511_v62 = vpop.f32.mrb[84].mxu0 }
 0x2bf   : > { %v3623_v63 = vpop.f32.mrb[84].mxu1  ;;  %v3512_v1 = vpop.f32.mrb[85].mxu0  ;;  %2697 = vst [vmem:[#allocation2 + $0x48] sm:$0xff] (!%p3381_p12), %v5147_v61 }
 0x2c0   : > { %v3513_v2 = vadd.f32 %v3512_v1, %v3511_v62  ;;  %v3624_v3 = vpop.f32.mrb[85].mxu1  ;;  %v3514_v5 = vpop.f32.mrb[86].mxu0 }
 0x2c1   : > { %v3625_v7 = vadd.f32 %v3624_v3, %v3623_v63  ;;  %v3626_v8 = vpop.f32.mrb[86].mxu1  ;;  %v3515_v9 = vpop.f32.mrb[87].mxu0 }
 0x2c2   : > { %v3516_v10 = vadd.f32 %v3515_v9, %v3514_v5  ;;  %v3627_v11 = vpop.f32.mrb[87].mxu1 }
 0x2c3   : > { %v5149_v12 = vadd.f32 %v3625_v7, %v3513_v2  ;;  %v3628_v13 = vadd.f32 %v3627_v11, %v3626_v8 }
 0x2c5   : > { %v5151_v14 = vadd.f32 %v3628_v13, %v3516_v10  ;;  %2698 = vst [vmem:[#allocation2 + $0x50] sm:$0xff] (!%p3381_p12), %v5149_v12 }
 0x2c6   : > { %v3517_v15 = vpop.f32.mrb[88].mxu0 }
 0x2c7   : > { %v3629_v16 = vpop.f32.mrb[88].mxu1  ;;  %v3518_v17 = vpop.f32.mrb[89].mxu0  ;;  %2699 = vst [vmem:[#allocation2 + $0x58] sm:$0xff] (!%p3381_p12), %v5151_v14 }
 0x2c8   : > { %v3519_v19 = vadd.f32 %v3518_v17, %v3517_v15  ;;  %v3630_v21 = vpop.f32.mrb[89].mxu1  ;;  %v3520_v22 = vpop.f32.mrb[90].mxu0 }
 0x2c9   : > { %v3631_v23 = vadd.f32 %v3630_v21, %v3629_v16  ;;  %v3632_v24 = vpop.f32.mrb[90].mxu1  ;;  %v3521_v0 = vpop.f32.mrb[91].mxu0 }
 0x2ca   : > { %v3522_v29 = vadd.f32 %v3521_v0, %v3520_v22  ;;  %v3633_v30 = vpop.f32.mrb[91].mxu1 }
 0x2cb   : > { %v5153_v31 = vadd.f32 %v3631_v23, %v3519_v19  ;;  %v3634_v32 = vadd.f32 %v3633_v30, %v3632_v24 }
 0x2cd   : > { %v5155_v33 = vadd.f32 %v3634_v32, %v3522_v29  ;;  %2700 = vst [vmem:[#allocation2 + $0x60] sm:$0xff] (!%p3381_p12), %v5153_v31 }
 0x2ce   : > { %v3523_v34 = vpop.f32.mrb[92].mxu0 }
 0x2cf   : > { %v3635_v36 = vpop.f32.mrb[92].mxu1  ;;  %v3524_v38 = vpop.f32.mrb[93].mxu0  ;;  %2701 = vst [vmem:[#allocation2 + $0x68] sm:$0xff] (!%p3381_p12), %v5155_v33 }
 0x2d0   : > { %v3525_v39 = vadd.f32 %v3524_v38, %v3523_v34  ;;  %v3636_v40 = vpop.f32.mrb[93].mxu1  ;;  %v3526_v41 = vpop.f32.mrb[94].mxu0 }
 0x2d1   : > { %v3637_v42 = vadd.f32 %v3636_v40, %v3635_v36  ;;  %v3638_v43 = vpop.f32.mrb[94].mxu1  ;;  %v3527_v44 = vpop.f32.mrb[95].mxu0 }
 0x2d2   : > { %v3528_v45 = vadd.f32 %v3527_v44, %v3526_v41  ;;  %v3639_v46 = vpop.f32.mrb[95].mxu1 }
 0x2d3   : > { %v5157_v47 = vadd.f32 %v3637_v42, %v3525_v39  ;;  %v3640_v48 = vadd.f32 %v3639_v46, %v3638_v43 }
 0x2d5   : > { %v5159_v49 = vadd.f32 %v3640_v48, %v3528_v45  ;;  %2702 = vst [vmem:[#allocation2 + $0x70] sm:$0xff] (!%p3381_p12), %v5157_v47 }
 0x2d6   : > { %v3529_v50 = vpop.f32.mrb[96].mxu0 }
 0x2d7   : > { %v3641_v51 = vpop.f32.mrb[96].mxu1  ;;  %v3530_v52 = vpop.f32.mrb[97].mxu0  ;;  %2703 = vst [vmem:[#allocation2 + $0x78] sm:$0xff] (!%p3381_p12), %v5159_v49 }
 0x2d8   : > { %v3531_v53 = vadd.f32 %v3530_v52, %v3529_v50  ;;  %v3642_v27 = vpop.f32.mrb[97].mxu1  ;;  %v3532_v28 = vpop.f32.mrb[98].mxu0 }
 0x2d9   : > { %v3643_v54 = vadd.f32 %v3642_v27, %v3641_v51  ;;  %v3644_v55 = vpop.f32.mrb[98].mxu1  ;;  %v3533_v56 = vpop.f32.mrb[99].mxu0 }
 0x2da   : > { %v3534_v57 = vadd.f32 %v3533_v56, %v3532_v28  ;;  %v3645_v58 = vpop.f32.mrb[99].mxu1 }
 0x2db   : > { %v5161_v60 = vadd.f32 %v3643_v54, %v3531_v53  ;;  %v3646_v62 = vadd.f32 %v3645_v58, %v3644_v55 }
 0x2dd   : > { %v5163_v63 = vadd.f32 %v3646_v62, %v3534_v57  ;;  %2704 = vst [vmem:[#allocation2 + $0x80] sm:$0xff] (!%p3381_p12), %v5161_v60 }
 0x2de   : > { %v3535_v1 = vpop.f32.mrb[100].mxu0 }
 0x2df   : > { %v3647_v2 = vpop.f32.mrb[100].mxu1  ;;  %v3536_v3 = vpop.f32.mrb[101].mxu0  ;;  %2705 = vst [vmem:[#allocation2 + $0x88] sm:$0xff] (!%p3381_p12), %v5163_v63 }
 0x2e0   : > { %v3537_v5 = vadd.f32 %v3536_v3, %v3535_v1  ;;  %v3648_v7 = vpop.f32.mrb[101].mxu1  ;;  %v3538_v8 = vpop.f32.mrb[102].mxu0 }
 0x2e1   : > { %v3649_v9 = vadd.f32 %v3648_v7, %v3647_v2  ;;  %v3650_v10 = vpop.f32.mrb[102].mxu1  ;;  %v3539_v11 = vpop.f32.mrb[103].mxu0 }
 0x2e2   : > { %v3540_v13 = vadd.f32 %v3539_v11, %v3538_v8  ;;  %v3651_v15 = vpop.f32.mrb[103].mxu1 }
 0x2e3   : > { %v5165_v16 = vadd.f32 %v3649_v9, %v3537_v5  ;;  %v3652_v17 = vadd.f32 %v3651_v15, %v3650_v10 }
 0x2e5   : > { %v5167_v19 = vadd.f32 %v3652_v17, %v3540_v13  ;;  %2706 = vst [vmem:[#allocation2 + $0x90] sm:$0xff] (!%p3381_p12), %v5165_v16 }
 0x2e6   : > { %v3541_v21 = vpop.f32.mrb[104].mxu0 }
 0x2e7   : > { %v3653_v22 = vpop.f32.mrb[104].mxu1  ;;  %v3542_v23 = vpop.f32.mrb[105].mxu0  ;;  %2707 = vst [vmem:[#allocation2 + $0x98] sm:$0xff] (!%p3381_p12), %v5167_v19 }
 0x2e8   : > { %v3543_v24 = vadd.f32 %v3542_v23, %v3541_v21  ;;  %v3654_v0 = vpop.f32.mrb[105].mxu1  ;;  %v3544_v29 = vpop.f32.mrb[106].mxu0 }
 0x2e9   : > { %v3655_v30 = vadd.f32 %v3654_v0, %v3653_v22  ;;  %v3656_v32 = vpop.f32.mrb[106].mxu1  ;;  %v3545_v34 = vpop.f32.mrb[107].mxu0 }
 0x2ea   : > { %v3546_v36 = vadd.f32 %v3545_v34, %v3544_v29  ;;  %v3657_v38 = vpop.f32.mrb[107].mxu1 }
 0x2eb   : > { %v5169_v39 = vadd.f32 %v3655_v30, %v3543_v24  ;;  %v3658_v40 = vadd.f32 %v3657_v38, %v3656_v32 }
 0x2ed   : > { %v5171_v41 = vadd.f32 %v3658_v40, %v3546_v36  ;;  %2708 = vst [vmem:[#allocation2 + $0xa0] sm:$0xff] (!%p3381_p12), %v5169_v39 }
 0x2ee   : > { %v3547_v42 = vpop.f32.mrb[108].mxu0 }
 0x2ef   : > { %v3659_v43 = vpop.f32.mrb[108].mxu1  ;;  %v3548_v44 = vpop.f32.mrb[109].mxu0  ;;  %2709 = vst [vmem:[#allocation2 + $0xa8] sm:$0xff] (!%p3381_p12), %v5171_v41 }
 0x2f0   : > { %v3549_v45 = vadd.f32 %v3548_v44, %v3547_v42  ;;  %v3660_v46 = vpop.f32.mrb[109].mxu1  ;;  %v3550_v48 = vpop.f32.mrb[110].mxu0 }
 0x2f1   : > { %v3661_v50 = vadd.f32 %v3660_v46, %v3659_v43  ;;  %v3662_v51 = vpop.f32.mrb[110].mxu1  ;;  %v3551_v52 = vpop.f32.mrb[111].mxu0 }
 0x2f2   : > { %v3552_v53 = vadd.f32 %v3551_v52, %v3550_v48  ;;  %v3663_v27 = vpop.f32.mrb[111].mxu1 }
 0x2f3   : > { %v5173_v28 = vadd.f32 %v3661_v50, %v3549_v45  ;;  %v3664_v54 = vadd.f32 %v3663_v27, %v3662_v51 }
 0x2f5   : > { %v5175_v55 = vadd.f32 %v3664_v54, %v3552_v53  ;;  %2710 = vst [vmem:[#allocation2 + $0xb0] sm:$0xff] (!%p3381_p12), %v5173_v28 }
 0x2f6   : > { %v3553_v56 = vpop.f32.mrb[112].mxu0 }
 0x2f7   : > { %v3665_v57 = vpop.f32.mrb[112].mxu1  ;;  %v3554_v58 = vpop.f32.mrb[113].mxu0  ;;  %2711 = vst [vmem:[#allocation2 + $0xb8] sm:$0xff] (!%p3381_p12), %v5175_v55 }
 0x2f8   : > { %v3555_v62 = vadd.f32 %v3554_v58, %v3553_v56  ;;  %v3666_v1 = vpop.f32.mrb[113].mxu1  ;;  %v3556_v2 = vpop.f32.mrb[114].mxu0 }
 0x2f9   : > { %v3667_v3 = vadd.f32 %v3666_v1, %v3665_v57  ;;  %v3668_v5 = vpop.f32.mrb[114].mxu1  ;;  %v3557_v7 = vpop.f32.mrb[115].mxu0 }
 0x2fa   : > { %v3558_v8 = vadd.f32 %v3557_v7, %v3556_v2  ;;  %v3669_v9 = vpop.f32.mrb[115].mxu1 }
 0x2fb   : > { %v5177_v10 = vadd.f32 %v3667_v3, %v3555_v62  ;;  %v3670_v11 = vadd.f32 %v3669_v9, %v3668_v5 }
 0x2fd   : > { %v5179_v13 = vadd.f32 %v3670_v11, %v3558_v8  ;;  %2712 = vst [vmem:[#allocation2 + $0xc0] sm:$0xff] (!%p3381_p12), %v5177_v10 }
 0x2fe   : > { %v3559_v15 = vpop.f32.mrb[116].mxu0 }
 0x2ff   : > { %v3671_v17 = vpop.f32.mrb[116].mxu1  ;;  %v3560_v21 = vpop.f32.mrb[117].mxu0  ;;  %2713 = vst [vmem:[#allocation2 + $0xc8] sm:$0xff] (!%p3381_p12), %v5179_v13 }
 0x300   : > { %v3561_v22 = vadd.f32 %v3560_v21, %v3559_v15  ;;  %v3672_v23 = vpop.f32.mrb[117].mxu1  ;;  %v3562_v24 = vpop.f32.mrb[118].mxu0 }
 0x301   : > { %v3673_v0 = vadd.f32 %v3672_v23, %v3671_v17  ;;  %v3674_v29 = vpop.f32.mrb[118].mxu1  ;;  %v3563_v30 = vpop.f32.mrb[119].mxu0 }
 0x302   : > { %v3564_v32 = vadd.f32 %v3563_v30, %v3562_v24  ;;  %v3675_v34 = vpop.f32.mrb[119].mxu1 }
 0x303   : > { %v5181_v36 = vadd.f32 %v3673_v0, %v3561_v22  ;;  %v3676_v38 = vadd.f32 %v3675_v34, %v3674_v29 }
 0x305   : > { %v5183_v40 = vadd.f32 %v3676_v38, %v3564_v32  ;;  %2714 = vst [vmem:[#allocation2 + $0xd0] sm:$0xff] (!%p3381_p12), %v5181_v36 }
 0x306   : > { %v3565_v42 = vpop.f32.mrb[120].mxu0 }
 0x307   : > { %v3566_v44 = vpop.f32.mrb[121].mxu0  ;;  %2715 = vst [vmem:[#allocation2 + $0xd8] sm:$0xff] (!%p3381_p12), %v5183_v40 }
 0x308   : > { %v3567_v45 = vadd.f32 %v3566_v44, %v3565_v42  ;;  %v3568_v48 = vpop.f32.mrb[122].mxu0 }
 0x309   : > { %v3569_v52 = vpop.f32.mrb[123].mxu0 }
 0x30a   : > { %v3677_v43 = vpop.f32.mrb[120].mxu1  ;;  %v3570_v53 = vadd.f32 %v3569_v52, %v3568_v48 }
 0x30b   : > { %v3678_v46 = vpop.f32.mrb[121].mxu1 }
 0x30c   : > { %v3679_v50 = vadd.f32 %v3678_v46, %v3677_v43  ;;  %v3680_v51 = vpop.f32.mrb[122].mxu1 }
 0x30d   : > { %v3681_v27 = vpop.f32.mrb[123].mxu1 }
 0x30e   : > { %v5185_v54 = vadd.f32 %v3679_v50, %v3567_v45  ;;  %v3682_v56 = vadd.f32 %v3681_v27, %v3680_v51  ;;  %v3571_v58 = vpop.f32.mrb[124].mxu0 }
 0x30f   : > { %v3572_v1 = vpop.f32.mrb[125].mxu0 }
 0x310   : > { %v5187_v57 = vadd.f32 %v3682_v56, %v3570_v53  ;;  %v3573_v2 = vadd.f32 %v3572_v1, %v3571_v58  ;;  %v3574_v5 = vpop.f32.mrb[126].mxu0  ;;  %2716 = vst [vmem:[#allocation2 + $0xe0] sm:$0xff] (!%p3381_p12), %v5185_v54 }
 0x311   : > { %v3575_v9 = vpop.f32.mrb[127].mxu0 }
 0x312   : > { %v3683_v62 = vpop.f32.mrb[124].mxu1  ;;  %v3576_v11 = vadd.f32 %v3575_v9, %v3574_v5  ;;  %2687 = sbr.rel (%p3381_p12) target bundleno = 795 (0x31b), region = 60  ;;  %2717 = vst [vmem:[#allocation2 + $0xe8] sm:$0xff] (!%p3381_p12), %v5187_v57 }
 0x313   : > { %v3684_v3 = vpop.f32.mrb[125].mxu1 }
 0x314   : > { %v3685_v7 = vadd.f32 %v3684_v3, %v3683_v62  ;;  %v3686_v8 = vpop.f32.mrb[126].mxu1 }
 0x315   : > { %v3687_v15 = vpop.f32.mrb[127].mxu1 }
 0x316   : > { %v5189_v17 = vadd.f32 %v3685_v7, %v3573_v2  ;;  %v3688_v21 = vadd.f32 %v3687_v15, %v3686_v8 }
 0x318   : > { %v5191_v22 = vadd.f32 %v3688_v21, %v3576_v11  ;;  %2718 = vst [vmem:[#allocation2 + $0xf0] sm:$0xff] (!%p3381_p12), %v5189_v17 }
 0x31a   : > { %2719 = vst [vmem:[#allocation2 + $0xf8] sm:$0xff] %v5191_v22 }
 0x31b PF: > { %s5536_s4 = sld [smem:[#allocation23_spill]] }
 0x321   : > { %p3382_p4 = scmp.le.s32.totalorder %s5536_s4, 0 }
 0x322   : > { %v2724_v23 = vld [vmem:[#allocation2] sm:$0xff] (!%p3382_p4)  ;;  %v2725_v24 = vld [vmem:[#allocation2 + $0x8] sm:$0xff] (!%p3382_p4)  ;;  %v2726_v0 = vld [vmem:[#allocation2 + $0x10] sm:$0xff] (!%p3382_p4) }
 0x323   : > { %2723 = sbr.rel (%p3382_p4) target bundleno = 821 (0x335), region = 64  ;;  %v2756_v29 = vadd.f32 (!%p3382_p4), %v2724_v23, %v5129_v4  ;;  %v2757_v30 = vadd.f32 (!%p3382_p4), %v2725_v24, %v5131_v6  ;;  %v2758_v32 = vadd.f32 (!%p3382_p4), %v2726_v0, %v5133_v18  ;;  %v2727_v34 = vld [vmem:[#allocation2 + $0x18] sm:$0xff] (!%p3382_p4)  ;;  %v2728_v38 = vld [vmem:[#allocation2 + $0x20] sm:$0xff] (!%p3382_p4)  ;;  %v2729_v42 = vld [vmem:[#allocation2 + $0x28] sm:$0xff] (!%p3382_p4) }
 0x324   : > { %v2759_v43 = vadd.f32 (!%p3382_p4), %v2727_v34, %v5135_v20  ;;  %v2760_v44 = vadd.f32 (!%p3382_p4), %v2728_v38, %v5137_v35  ;;  %v2761_v45 = vadd.f32 (!%p3382_p4), %v2729_v42, %v5139_v37  ;;  %v2730_v46 = vld [vmem:[#allocation2 + $0x30] sm:$0xff] (!%p3382_p4)  ;;  %v2731_v48 = vld [vmem:[#allocation2 + $0x38] sm:$0xff] (!%p3382_p4)  ;;  %v2732_v50 = vld [vmem:[#allocation2 + $0x40] sm:$0xff] (!%p3382_p4) }
 0x325   : > { %2788 = vst [vmem:[#allocation2] sm:$0xff] (!%p3382_p4), %v2756_v29  ;;  %2789 = vst [vmem:[#allocation2 + $0x8] sm:$0xff] (!%p3382_p4), %v2757_v30  ;;  %v2762_v4 = vadd.f32 (!%p3382_p4), %v2730_v46, %v5141_v25  ;;  %v2763_v6 = vadd.f32 (!%p3382_p4), %v2731_v48, %v5143_v26  ;;  %v2764_v18 = vadd.f32 (!%p3382_p4), %v2732_v50, %v5145_v59  ;;  %v2733_v51 = vld [vmem:[#allocation2 + $0x48] sm:$0xff] (!%p3382_p4)  ;;  %v2734_v52 = vld [vmem:[#allocation2 + $0x50] sm:$0xff] (!%p3382_p4) }
 0x326   : > { %2790 = vst [vmem:[#allocation2 + $0x10] sm:$0xff] (!%p3382_p4), %v2758_v32  ;;  %v2735_v53 = vld [vmem:[#allocation2 + $0x58] sm:$0xff] (!%p3382_p4)  ;;  %2791 = vst [vmem:[#allocation2 + $0x18] sm:$0xff] (!%p3382_p4), %v2759_v43  ;;  %v2765_v20 = vadd.f32 (!%p3382_p4), %v2733_v51, %v5147_v61  ;;  %v2766_v35 = vadd.f32 (!%p3382_p4), %v2734_v52, %v5149_v12  ;;  %v2736_v27 = vld [vmem:[#allocation2 + $0x60] sm:$0xff] (!%p3382_p4) }
 0x327   : > { %2792 = vst [vmem:[#allocation2 + $0x20] sm:$0xff] (!%p3382_p4), %v2760_v44  ;;  %2793 = vst [vmem:[#allocation2 + $0x28] sm:$0xff] (!%p3382_p4), %v2761_v45  ;;  %v2767_v37 = vadd.f32 (!%p3382_p4), %v2735_v53, %v5151_v14  ;;  %v2737_v56 = vld [vmem:[#allocation2 + $0x68] sm:$0xff] (!%p3382_p4)  ;;  %v2738_v58 = vld [vmem:[#allocation2 + $0x70] sm:$0xff] (!%p3382_p4)  ;;  %v2768_v25 = vadd.f32 (!%p3382_p4), %v2736_v27, %v5153_v31 }
 0x328   : > { %2794 = vst [vmem:[#allocation2 + $0x30] sm:$0xff] (!%p3382_p4), %v2762_v4  ;;  %2795 = vst [vmem:[#allocation2 + $0x38] sm:$0xff] (!%p3382_p4), %v2763_v6  ;;  %v2769_v26 = vadd.f32 (!%p3382_p4), %v2737_v56, %v5155_v33  ;;  %v2770_v59 = vadd.f32 (!%p3382_p4), %v2738_v58, %v5157_v47  ;;  %v2739_v62 = vld [vmem:[#allocation2 + $0x78] sm:$0xff] (!%p3382_p4)  ;;  %v2740_v1 = vld [vmem:[#allocation2 + $0x80] sm:$0xff] (!%p3382_p4) }
 0x329   : > { %2796 = vst [vmem:[#allocation2 + $0x40] sm:$0xff] (!%p3382_p4), %v2764_v18  ;;  %v2741_v2 = vld [vmem:[#allocation2 + $0x88] sm:$0xff] (!%p3382_p4)  ;;  %2797 = vst [vmem:[#allocation2 + $0x48] sm:$0xff] (!%p3382_p4), %v2765_v20  ;;  %v2771_v61 = vadd.f32 (!%p3382_p4), %v2739_v62, %v5159_v49  ;;  %v2772_v12 = vadd.f32 (!%p3382_p4), %v2740_v1, %v5161_v60  ;;  %v2742_v3 = vld [vmem:[#allocation2 + $0x90] sm:$0xff] (!%p3382_p4) }
 0x32a   : > { %2798 = vst [vmem:[#allocation2 + $0x50] sm:$0xff] %v2766_v35  ;;  %2799 = vst [vmem:[#allocation2 + $0x58] sm:$0xff] %v2767_v37  ;;  %v2773_v14 = vadd.f32 %v2741_v2, %v5163_v63  ;;  %v2743_v5 = vld [vmem:[#allocation2 + $0x98] sm:$0xff]  ;;  %v2744_v7 = vld [vmem:[#allocation2 + $0xa0] sm:$0xff]  ;;  %v2774_v31 = vadd.f32 %v2742_v3, %v5165_v16 }
 0x32b   : > { %2800 = vst [vmem:[#allocation2 + $0x60] sm:$0xff] %v2768_v25  ;;  %2801 = vst [vmem:[#allocation2 + $0x68] sm:$0xff] %v2769_v26  ;;  %v2775_v33 = vadd.f32 %v2743_v5, %v5167_v19  ;;  %v2776_v47 = vadd.f32 %v2744_v7, %v5169_v39  ;;  %v2745_v8 = vld [vmem:[#allocation2 + $0xa8] sm:$0xff]  ;;  %v2746_v9 = vld [vmem:[#allocation2 + $0xb0] sm:$0xff] }
 0x32c   : > { %2802 = vst [vmem:[#allocation2 + $0x70] sm:$0xff] %v2770_v59  ;;  %v2747_v11 = vld [vmem:[#allocation2 + $0xb8] sm:$0xff]  ;;  %2803 = vst [vmem:[#allocation2 + $0x78] sm:$0xff] %v2771_v61  ;;  %v2777_v49 = vadd.f32 %v2745_v8, %v5171_v41  ;;  %v2778_v60 = vadd.f32 %v2746_v9, %v5173_v28  ;;  %v2748_v15 = vld [vmem:[#allocation2 + $0xc0] sm:$0xff] }
 0x32d   : > { %2804 = vst [vmem:[#allocation2 + $0x80] sm:$0xff] %v2772_v12  ;;  %2805 = vst [vmem:[#allocation2 + $0x88] sm:$0xff] %v2773_v14  ;;  %v2779_v63 = vadd.f32 %v2747_v11, %v5175_v55  ;;  %v2749_v21 = vld [vmem:[#allocation2 + $0xc8] sm:$0xff]  ;;  %v2750_v23 = vld [vmem:[#allocation2 + $0xd0] sm:$0xff]  ;;  %v2780_v16 = vadd.f32 %v2748_v15, %v5177_v10 }
 0x32e   : > { %2806 = vst [vmem:[#allocation2 + $0x90] sm:$0xff] %v2774_v31  ;;  %2807 = vst [vmem:[#allocation2 + $0x98] sm:$0xff] %v2775_v33  ;;  %v2781_v19 = vadd.f32 %v2749_v21, %v5179_v13  ;;  %v2782_v39 = vadd.f32 %v2750_v23, %v5181_v36  ;;  %v2751_v24 = vld [vmem:[#allocation2 + $0xd8] sm:$0xff]  ;;  %v2752_v0 = vld [vmem:[#allocation2 + $0xe0] sm:$0xff] }
 0x32f   : > { %2808 = vst [vmem:[#allocation2 + $0xa0] sm:$0xff] %v2776_v47  ;;  %v2753_v29 = vld [vmem:[#allocation2 + $0xe8] sm:$0xff]  ;;  %2809 = vst [vmem:[#allocation2 + $0xa8] sm:$0xff] %v2777_v49  ;;  %v2783_v41 = vadd.f32 %v2751_v24, %v5183_v40  ;;  %v2784_v28 = vadd.f32 %v2752_v0, %v5185_v54  ;;  %v2754_v30 = vld [vmem:[#allocation2 + $0xf0] sm:$0xff] }
 0x330   : > { %2810 = vst [vmem:[#allocation2 + $0xb0] sm:$0xff] %v2778_v60  ;;  %2811 = vst [vmem:[#allocation2 + $0xb8] sm:$0xff] %v2779_v63  ;;  %v2785_v55 = vadd.f32 %v2753_v29, %v5187_v57  ;;  %v2755_v32 = vld [vmem:[#allocation2 + $0xf8] sm:$0xff]  ;;  %v2786_v10 = vadd.f32 %v2754_v30, %v5189_v17 }
 0x331   : > { %2812 = vst [vmem:[#allocation2 + $0xc0] sm:$0xff] %v2780_v16  ;;  %2813 = vst [vmem:[#allocation2 + $0xc8] sm:$0xff] %v2781_v19  ;;  %v2787_v13 = vadd.f32 %v2755_v32, %v5191_v22 }
 0x332   : > { %2814 = vst [vmem:[#allocation2 + $0xd0] sm:$0xff] %v2782_v39  ;;  %2815 = vst [vmem:[#allocation2 + $0xd8] sm:$0xff] %v2783_v41 }
 0x333   : > { %2816 = vst [vmem:[#allocation2 + $0xe0] sm:$0xff] %v2784_v28  ;;  %2817 = vst [vmem:[#allocation2 + $0xe8] sm:$0xff] %v2785_v55 }
 0x334   : > { %2818 = vst [vmem:[#allocation2 + $0xf0] sm:$0xff] %v2786_v10  ;;  %2819 = vst [vmem:[#allocation2 + $0xf8] sm:$0xff] %v2787_v13 }
 0x335 PF: > { %s5537_s29 = sld [smem:[#allocation23_spill]] }
 0x33b   : > { %p3383_p0 = scmp.ne.s32.totalorder %s5537_s29, 1 }
 0x33c   : > { %v2824_v36 = vld [vmem:[#allocation2] sm:$0xff] (!%p3383_p0)  ;;  %s5538_s13 = sld [smem:[#allocation36_spill]] (!%p3383_p0)  ;;  %v2825_v54 = vld [vmem:[#allocation2 + $0x8] sm:$0xff] (!%p3383_p0)  ;;  %v2826_v22 = vld [vmem:[#allocation2 + $0x10] sm:$0xff] (!%p3383_p0) }
 0x33d   : > { %2823 = sbr.rel (%p3383_p0) target bundleno = 853 (0x355), region = 68  ;;  %v2827_v34 = vld [vmem:[#allocation2 + $0x18] sm:$0xff] (!%p3383_p0)  ;;  %v2828_v38 = vld [vmem:[#allocation2 + $0x20] sm:$0xff] (!%p3383_p0)  ;;  %v2829_v45 = vld [vmem:[#allocation2 + $0x28] sm:$0xff] (!%p3383_p0) }
 0x33e   : > { %v2830_v46 = vld [vmem:[#allocation2 + $0x30] sm:$0xff] (!%p3383_p0)  ;;  %v2831_v48 = vld [vmem:[#allocation2 + $0x38] sm:$0xff] (!%p3383_p0)  ;;  %v2832_v18 = vld [vmem:[#allocation2 + $0x40] sm:$0xff] (!%p3383_p0) }
 0x33f   : > { %v2833_v51 = vld [vmem:[#allocation2 + $0x48] sm:$0xff] (!%p3383_p0)  ;;  %v2834_v52 = vld [vmem:[#allocation2 + $0x50] sm:$0xff] (!%p3383_p0)  ;;  %v2835_v37 = vld [vmem:[#allocation2 + $0x58] sm:$0xff] (!%p3383_p0) }
 0x340   : > { %v2836_v27 = vld [vmem:[#allocation2 + $0x60] sm:$0xff] (!%p3383_p0)  ;;  %v2837_v56 = vld [vmem:[#allocation2 + $0x68] sm:$0xff] (!%p3383_p0)  ;;  %v2838_v59 = vld [vmem:[#allocation2 + $0x70] sm:$0xff] (!%p3383_p0) }
 0x341   : > { %v2839_v62 = vld [vmem:[#allocation2 + $0x78] sm:$0xff] (!%p3383_p0)  ;;  %v2840_v1 = vld [vmem:[#allocation2 + $0x80] sm:$0xff] (!%p3383_p0)  ;;  %v2841_v14 = vld [vmem:[#allocation2 + $0x88] sm:$0xff] (!%p3383_p0) }
 0x342   : > { %v5267_v40 = vld [vmem:[%s5538_s13] ss:$0 sm:$0xff] (!%p3383_p0)  ;;  %v2842_v3 = vld [vmem:[#allocation2 + $0x90] sm:$0xff] (!%p3383_p0)  ;;  %v2843_v5 = vld [vmem:[#allocation2 + $0x98] sm:$0xff] (!%p3383_p0) }
 0x343   : > { %v2863_v57 = vadd.f32 (!%p3383_p0), %v5267_v40, %v2824_v36  ;;  %v2864_v17 = vadd.f32 (!%p3383_p0), %v5267_v40, %v2825_v54  ;;  %v2865_v42 = vadd.f32 (!%p3383_p0), %v5267_v40, %v2826_v22  ;;  %v2866_v43 = vadd.f32 (!%p3383_p0), %v5267_v40, %v2827_v34  ;;  %v2844_v47 = vld [vmem:[#allocation2 + $0xa0] sm:$0xff] (!%p3383_p0)  ;;  %v2845_v8 = vld [vmem:[#allocation2 + $0xa8] sm:$0xff] (!%p3383_p0)  ;;  %v2846_v9 = vld [vmem:[#allocation2 + $0xb0] sm:$0xff] (!%p3383_p0) }
 0x344   : > { %v2867_v44 = vadd.f32 %v5267_v40, %v2828_v38  ;;  %v2868_v50 = vadd.f32 %v5267_v40, %v2829_v45  ;;  %v2869_v4 = vadd.f32 %v5267_v40, %v2830_v46  ;;  %v2870_v6 = vadd.f32 %v5267_v40, %v2831_v48  ;;  %v2847_v63 = vld [vmem:[#allocation2 + $0xb8] sm:$0xff]  ;;  %v2848_v15 = vld [vmem:[#allocation2 + $0xc0] sm:$0xff]  ;;  %v2849_v21 = vld [vmem:[#allocation2 + $0xc8] sm:$0xff] }
 0x345   : > { %2895 = vst [vmem:[%s5195_s7] sm:$0xff] %v2863_v57  ;;  %2896 = vst [vmem:[%s5195_s7 + $0x8] sm:$0xff] %v2864_v17  ;;  %v2871_v53 = vadd.f32 %v5267_v40, %v2832_v18  ;;  %v2872_v20 = vadd.f32 %v5267_v40, %v2833_v51  ;;  %v2873_v35 = vadd.f32 %v5267_v40, %v2834_v52  ;;  %v2850_v39 = vld [vmem:[#allocation2 + $0xd0] sm:$0xff]  ;;  %v2851_v24 = vld [vmem:[#allocation2 + $0xd8] sm:$0xff] }
 0x346   : > { %2897 = vst [vmem:[%s5195_s7 + $0x10] sm:$0xff] %v2865_v42  ;;  %2898 = vst [vmem:[%s5195_s7 + $0x18] sm:$0xff] %v2866_v43  ;;  %v2874_v58 = vadd.f32 %v5267_v40, %v2835_v37  ;;  %v2875_v25 = vadd.f32 %v5267_v40, %v2836_v27  ;;  %v2876_v26 = vadd.f32 %v5267_v40, %v2837_v56  ;;  %v2852_v0 = vld [vmem:[#allocation2 + $0xe0] sm:$0xff]  ;;  %v2853_v55 = vld [vmem:[#allocation2 + $0xe8] sm:$0xff] }
 0x347   : > { %2899 = vst [vmem:[%s5195_s7 + $0x20] sm:$0xff] %v2867_v44  ;;  %2900 = vst [vmem:[%s5195_s7 + $0x28] sm:$0xff] %v2868_v50  ;;  %v2877_v2 = vadd.f32 %v5267_v40, %v2838_v59  ;;  %v2878_v61 = vadd.f32 %v5267_v40, %v2839_v62  ;;  %v2879_v12 = vadd.f32 %v5267_v40, %v2840_v1  ;;  %v2854_v30 = vld [vmem:[#allocation2 + $0xf0] sm:$0xff]  ;;  %v2855_v32 = vld [vmem:[#allocation2 + $0xf8] sm:$0xff] }
 0x348   : > { %2901 = vst [vmem:[%s5195_s7 + $0x30] sm:$0xff] %v2869_v4  ;;  %2902 = vst [vmem:[%s5195_s7 + $0x38] sm:$0xff] %v2870_v6  ;;  %v2880_v7 = vadd.f32 %v5267_v40, %v2841_v14  ;;  %v2881_v31 = vadd.f32 %v5267_v40, %v2842_v3  ;;  %v2882_v33 = vadd.f32 %v5267_v40, %v2843_v5 }
 0x349   : > { %2903 = vst [vmem:[%s5195_s7 + $0x40] sm:$0xff] %v2871_v53  ;;  %2904 = vst [vmem:[%s5195_s7 + $0x48] sm:$0xff] %v2872_v20  ;;  %v2883_v11 = vadd.f32 %v5267_v40, %v2844_v47  ;;  %v2884_v49 = vadd.f32 %v5267_v40, %v2845_v8  ;;  %v2885_v60 = vadd.f32 %v5267_v40, %v2846_v9 }
 0x34a   : > { %2905 = vst [vmem:[%s5195_s7 + $0x50] sm:$0xff] %v2873_v35  ;;  %2906 = vst [vmem:[%s5195_s7 + $0x58] sm:$0xff] %v2874_v58  ;;  %v2886_v23 = vadd.f32 %v5267_v40, %v2847_v63  ;;  %v2887_v16 = vadd.f32 %v5267_v40, %v2848_v15  ;;  %v2888_v19 = vadd.f32 %v5267_v40, %v2849_v21 }
 0x34b   : > { %2907 = vst [vmem:[%s5195_s7 + $0x60] sm:$0xff] %v2875_v25  ;;  %2908 = vst [vmem:[%s5195_s7 + $0x68] sm:$0xff] %v2876_v26  ;;  %v2889_v29 = vadd.f32 %v5267_v40, %v2850_v39  ;;  %v2890_v41 = vadd.f32 %v5267_v40, %v2851_v24  ;;  %v2891_v28 = vadd.f32 %v5267_v40, %v2852_v0 }
 0x34c   : > { %2909 = vst [vmem:[%s5195_s7 + $0x70] sm:$0xff] %v2877_v2  ;;  %2910 = vst [vmem:[%s5195_s7 + $0x78] sm:$0xff] %v2878_v61  ;;  %v2892_v10 = vadd.f32 %v5267_v40, %v2853_v55  ;;  %v2893_v13 = vadd.f32 %v5267_v40, %v2854_v30  ;;  %v2894_v36 = vadd.f32 %v5267_v40, %v2855_v32 }
 0x34d   : > { %2911 = vst [vmem:[%s5195_s7 + $0x80] sm:$0xff] %v2879_v12  ;;  %2912 = vst [vmem:[%s5195_s7 + $0x88] sm:$0xff] %v2880_v7 }
 0x34e   : > { %2913 = vst [vmem:[%s5195_s7 + $0x90] sm:$0xff] %v2881_v31  ;;  %2914 = vst [vmem:[%s5195_s7 + $0x98] sm:$0xff] %v2882_v33 }
 0x34f   : > { %2915 = vst [vmem:[%s5195_s7 + $0xa0] sm:$0xff] %v2883_v11  ;;  %2916 = vst [vmem:[%s5195_s7 + $0xa8] sm:$0xff] %v2884_v49 }
 0x350   : > { %2917 = vst [vmem:[%s5195_s7 + $0xb0] sm:$0xff] %v2885_v60  ;;  %2918 = vst [vmem:[%s5195_s7 + $0xb8] sm:$0xff] %v2886_v23 }
 0x351   : > { %2919 = vst [vmem:[%s5195_s7 + $0xc0] sm:$0xff] %v2887_v16  ;;  %2920 = vst [vmem:[%s5195_s7 + $0xc8] sm:$0xff] %v2888_v19 }
 0x352   : > { %2921 = vst [vmem:[%s5195_s7 + $0xd0] sm:$0xff] %v2889_v29  ;;  %2922 = vst [vmem:[%s5195_s7 + $0xd8] sm:$0xff] %v2890_v41 }
 0x353   : > { %2923 = vst [vmem:[%s5195_s7 + $0xe0] sm:$0xff] %v2891_v28  ;;  %2924 = vst [vmem:[%s5195_s7 + $0xe8] sm:$0xff] %v2892_v10 }
 0x354   : > { %2925 = vst [vmem:[%s5195_s7 + $0xf0] sm:$0xff] %v2893_v13  ;;  %2926 = vst [vmem:[%s5195_s7 + $0xf8] sm:$0xff] %v2894_v36 }
 0x355 PF: > { %s5539_s26 = sld [smem:[#allocation24_spill]]  ;;  %s5540_s1 = sld [smem:[#allocation37_spill]] }
 0x356   : > { %s2946_s23 = sshll.u32 %s5195_s7, 4  ;;  %s2928_s18 = scalar_lea.sflag [#allocation5], %s4700_s6  ;;  %s5340_s23 = int_to_ptr.vmem [resolvable:$true] %s2946_s23 }
 0x357   : > { %s4126_s17 = scalar_lea.vmem %s5340_s23, 4096  ;;  %p5541_p5 = scmp.ne.s32.totalorder %s5518_s15, 0 }
 0x358   : > { %p4127_p3 = scmp.ne.s32.totalorder %s5340_s23, %s4126_s17  ;;  %s4324_s9 = smov [#allocation11]  }
 0x359   : > { %s4130_s16 = sshll.u32 %s4324_s9, 4  ;;  %s4131_s16 = int_to_ptr.vmem [resolvable:$false] %s4130_s16 }
 0x35a   : > { %p4128_p11 = pnand %p4127_p3, %p5541_p5  ;;  %s4132_s4 = scalar_lea.vmem %s4131_s16, 8192 }
 0x35b   : > { %s3463_s12 = sshll.u32 %s5539_s26, 12  ;;  %p4133_p9 = scmp.lt.s32.totalorder %s5340_s23, %s4131_s16 }
 0x35c   : > { %s5337_s27 = scalar_lea.hbm %s5540_s1, %s3463_s12  ;;  %p4129_p6 = pneg %p4128_p11 }
 0x35d   : > { %p4134_p1 = scmp.lt.s32.totalorder %s4132_s4, %s4126_s17 }
 0x35f   : > { %p4135_p10 = por %p4134_p1, %p4133_p9 }
 0x361   : > { %p4136_p2 = pnand %p4135_p10, %p4129_p6 }
 0x363   : > { %4139 = shalt.err (!%p4136_p2)
}
 0x364   : > { %s4140_s7 = scalar_lea.hbm %s5337_s27, 4096  ;;  %s4144_s11 = scalar_lea.hbm %s5540_s1, 8192 }
 0x365   : > { %p4141_p8 = scmp.ne.s32.totalorder %s5337_s27, %s4140_s7  ;;  %p4145_p12 = scmp.lt.u32.totalorder %s5337_s27, %s5540_s1 }
 0x366   : > { %p4146_p4 = scmp.lt.u32.totalorder %s4144_s11, %s4140_s7  ;;  %p4148_p3 = scmp.lt.u32.totalorder %s4140_s7, %s5337_s27 }
 0x367   : > { %p4142_p7 = pnand %p4141_p8, %p5541_p5 }
 0x368   : > { %p4147_p0 = por %p4146_p4, %p4145_p12 }
 0x369   : > { %p4143_p13 = pneg %p4142_p7 }
 0x36a   : > { %p4149_p11 = por %p4148_p3, %p4147_p0 }
 0x36c   : > { %p4150_p6 = pnand %p4149_p11, %p4143_p13 }
 0x36e   : > { %4153 = shalt.err (!%p4150_p6)
}
 0x36f   : > { %s4325_s19 = smov 128   ;;  %s5542_s0 = sld [smem:[#allocation23_spill]] }
 0x370   : > { %s4326_s17 = smov 8   ;;  %s3464_s16 = sshll.u32 %s5539_s26, 8 }
 0x371   : > { %3697 = dma.vmem_to_hbm [thread:$0]  (%p5541_p5), %s5340_s23, 4096, %s5337_s27, %s2928_s18, %s4325_s19, %s4325_s19, %s4326_s17  }
 0x372   : > { %s2965_s7 = sshll.u32 %s4859_s14, 4  ;;  %s5543_s13 = sld [smem:[#allocation38_spill]]  ;;  %s5369_s7 = int_to_ptr.vmem [resolvable:$true] %s2965_s7 }
 0x373   : > { %s5378_s1 = scalar_lea.sflag [#allocation13], %s407_s5  ;;  %s4154_s15 = scalar_lea.vmem %s5369_s7, 8192 }
 0x374   : > { %p4155_p5 = scmp.ne.s32.totalorder %s5369_s7, %s4154_s15  ;;  %p5544_p9 = scmp.ne.s32.totalorder %s5522_s30, 0 }
 0x375   : > { %s3390_s9 = sshll.u32 %s5542_s0, 2  ;;  %s4327_s6 = smov [#allocation12]  }
 0x376   : > { %s2962_s4 = sadd.s32 %s3464_s16, %s3390_s9  ;;  %p4156_p1 = pnand %p4155_p5, %p5544_p9 }
 0x377   : > { %s3392_s29 = sshll.u32 %s2962_s4, 6  ;;  %s4158_s14 = sshll.u32 %s4327_s6, 4  ;;  %s4159_s14 = int_to_ptr.vmem [resolvable:$false] %s4158_s14 }
 0x378   : > { %s5374_s12 = scalar_lea.hbm %s5543_s13, %s3392_s29  ;;  %p4157_p10 = pneg %p4156_p1 }
 0x379   : > { %s4160_s26 = scalar_lea.vmem %s4159_s14, 16384  ;;  %p4161_p2 = scmp.lt.s32.totalorder %s5369_s7, %s4159_s14 }
 0x37a   : > { %p4162_p8 = scmp.lt.s32.totalorder %s4160_s26, %s4154_s15 }
 0x37c   : > { %p4163_p7 = por %p4162_p8, %p4161_p2 }
 0x37e   : > { %p4164_p13 = pnand %p4163_p7, %p4157_p10 }
 0x380   : > { %4167 = shalt.err (!%p4164_p13)
}
 0x381   : > { %s4168_s5 = scalar_lea.hbm %s5374_s12, 8192  ;;  %s4172_s18 = scalar_lea.hbm %s5543_s13, 32768 }
 0x382   : > { %p4169_p12 = scmp.ne.s32.totalorder %s5374_s12, %s4168_s5  ;;  %p4173_p3 = scmp.lt.u32.totalorder %s5374_s12, %s5543_s13 }
 0x383   : > { %p4174_p11 = scmp.lt.u32.totalorder %s4172_s18, %s4168_s5  ;;  %p4176_p5 = scmp.lt.u32.totalorder %s4168_s5, %s5374_s12 }
 0x384   : > { %p4170_p4 = pnand %p4169_p12, %p5544_p9 }
 0x385   : > { %p4175_p6 = por %p4174_p11, %p4173_p3 }
 0x386   : > { %p4171_p0 = pneg %p4170_p4 }
 0x387   : > { %p4177_p1 = por %p4176_p5, %p4175_p6 }
 0x389   : > { %p4178_p10 = pnand %p4177_p1, %p4171_p0 }
 0x38b   : > { %4181 = shalt.err (!%p4178_p10)
}
 0x38c   : > { %s4328_s17 = smov 256   ;;  %s4329_s9 = smov 512  }
 0x38d   : > { %s4330_s16 = smov 16  }
 0x38e   : > { %3698 = dma.vmem_to_hbm [thread:$0]  (%p5544_p9), %s5369_s7, 8192, %s5374_s12, %s5378_s1, %s4328_s17, %s4329_s9, %s4330_s16  }
 0x38f PF: > { %s5545_s4 = sld [smem:[#allocation21_spill]]  ;;  %p3722_p2 = scmp.ge.s32.totalorder %s4312_s10, 2 }
 0x390   : > { %p5546_p8 = scmp.ne.s32.totalorder %s5520_s24, 0 }
 0x392   : > { %p3715_p7 = pnand %p3722_p2, %p5546_p8 }
 0x395   : > { %s2980_s29 = sand.u32 1, %s5545_s4  }
 0x396   : > { %s2981_s20 = scalar_lea.sflag [#allocation5], %s2980_s29 }
 0x397   : > { %4251 = dma.done.wait (!%p3715_p7), %s2981_s20, 4096  }
 0x398   : > { %4253 = vsyncadd (!%p3715_p7), %s2981_s20, 4294963200  ;;  %s5547_s11 = sld [smem:[#allocation33_spill]]  ;;  %s2989_s15 = sand.u32 1, %s4260_s21  }
 0x399   : > { %s2990_s6 = scalar_lea.sflag [#allocation13], %s2989_s15 }
 0x39e   : > { %p5548_p13 = scmp.ne.s32.totalorder %s5547_s11, 0 }
 0x3a0   : > { %p3718_p12 = pnand %p3722_p2, %p5548_p13 }
 0x3a2   : > { %4255 = dma.done.wait (!%p3718_p12), %s2990_s6, 8192  }
 0x3a3   : > { %4257 = vsyncadd (!%p3718_p12), %s2990_s6, 4294959104  ;;  %s32_s10 = sadd.s32 1, %s4312_s10   ;;  %s5550_s24 = sld [smem:[#allocation19_spill]] }
 0x3a4   : > { %p5410_p9 = scmp.ge.s32.totalorder %s32_s10, 6   ;;  %s5551_s23 = sld [smem:[#allocation32_spill]] }
 0x3a5   : > { %s5552_s1 = sld [smem:[#allocation20_spill]]  ;;  %s5553_s26 = sld [smem:[#allocation30_spill]] }
 0x3a6   : > { %s5554_s7 = sld [smem:[#allocation22_spill]]  ;;  %s5555_s29 = sld [smem:[#allocation31_spill]] }
 0x3a7   : > { %s5556_s12 = sld [smem:[#allocation25_spill]]  ;;  %s5557_s14 = sld [smem:[#allocation27_spill]] }
 0x3a8   : > { %s5558_s9 = sld [smem:[#allocation29_spill]]  ;;  %s5560_s21 = smov %s4264_s22 }
 0x3a9   : > { %s5561_s22 = smov %s5550_s24  ;;  %s5562_s24 = smov %s4276_s25 }
 0x3aa   : > { %s5564_s27 = smov %s4288_s28  ;;  %s5566_s30 = smov %s4304_s8 }
 0x3ab   : > { %s5563_s25 = smov %s5552_s1  ;;  %31 = sbr.rel (!%p5410_p9) target bundleno = 22 (0x16), region = 151 }
 0x3ac   : > { %s5565_s28 = smov %s5554_s7 }
 0x3ad   : > { %s5567_s7 = smov %s5556_s12  ;;  %s5568_s8 = smov %s5557_s14 }
 0x3b2   :  { %2995 = vsyncpa [#allocation4], 1 }
 0x3b3   :  { %2997 = vsyncpa [#allocation4 + $0x1], 1 }
 0x3b4   :  { %2998 = vsyncpa [#allocation7], 1 }
 0x3b5   :  { %3000 = vsyncpa [#allocation7 + $0x1], 1 }
 0x3b6   :  { %3001 = vsyncpa [#allocation10], 1 }
 0x3b7   :  { %3003 = vsyncpa [#allocation10 + $0x1], 1 }
 0x3b8   :  { %3004 = vsyncpa [#allocation5], 1 }
 0x3b9   :  { %3006 = vsyncpa [#allocation5 + $0x1], 1 }
 0x3ba   :  { %3007 = vsyncpa [#allocation13], 1 }
 0x3bb   :  { %3009 = vsyncpa [#allocation13 + $0x1], 1 }

</bundles_post_ra>
